<compile_context>
chip_gen: v6e
topology: v6e:2x2x1
jax: 0.10.0
libtpu: 0.0.40
codegen_flags: <defaults>
</compile_context>

<pallas_src>
import functools

import jax
import jax.numpy as jnp
from jax.experimental import pallas as pl
from jax.experimental.pallas import tpu as pltpu


def _round_up(x, m):
    return (x + m - 1) // m * m


# ---------------------------------------------------------------------------
# Pallas kernel: direct 3x3 / stride-2 conv + folded BN, one batch sample per
# grid step.  Block shapes seen by the kernel:
#   x_ref : (1, 4*A, B, Ci)  bf16  phase-decomposed, spatially padded input
#                                   (phase p = (kh%2)*2 + kw%2 occupies rows
#                                    [p*A, (p+1)*A))
#   w_ref : (9, Ci, Co)      bf16  conv weight with BN scale pre-folded
#   b_ref : (1, Co)          f32   BN shift = beta - mean*scale
#   o_ref : (1, Ho*Wo, Co)   bf16
# ---------------------------------------------------------------------------
def _make_conv_bn_kernel(Ho, Wo, A, Ci, Co):
    M = Ho * Wo

    def kernel(x_ref, w_ref, b_ref, o_ref):
        acc = jnp.zeros((M, Co), jnp.float32)
        for kh in range(3):
            for kw in range(3):
                p = (kh % 2) * 2 + (kw % 2)
                r0 = p * A + kh // 2
                c0 = kw // 2
                win = x_ref[0, r0:r0 + Ho, c0:c0 + Wo, :]
                # ReLU in-kernel (VPU slot, free under the MXU-bound loop).
                win = jnp.maximum(win, 0.0).astype(jnp.bfloat16)
                acc = acc + jnp.dot(win.reshape(M, Ci), w_ref[kh * 3 + kw],
                                    preferred_element_type=jnp.float32)
        o_ref[0] = (acc + b_ref[...]).astype(o_ref.dtype)

    return kernel


# ---------------------------------------------------------------------------
# Wrapper glue
# ---------------------------------------------------------------------------
def _phase_decompose(x_nhwc):
    """Spatial pad (+1 each side, extra bottom/right to make dims even) and
    split into the four stride-2 phases:
       (N, H, W, C) -> (N, 4*A, B, C) with A=(H+2+eh)//2, B=(W+2+ew)//2 and
       row (b*2+d)*A + a, col c holding x_padded[2a+b, 2c+d, :]."""
    N, H, W, C = x_nhwc.shape
    eh, ew = H % 2, W % 2
    xp = jnp.pad(x_nhwc, ((0, 0), (1, 1 + eh), (1, 1 + ew), (0, 0)))
    Hp, Wp = H + 2 + eh, W + 2 + ew
    A, B = Hp // 2, Wp // 2
    x_ph = xp.reshape(N, A, 2, B, 2, C).transpose(0, 2, 4, 1, 3, 5)
    return x_ph.reshape(N, 4 * A, B, C), A, B


def _relu_conv_bn_layer(x_nhwc, params):
    """One ReLUConvBN(stride=2) layer.  x_nhwc: (N, H, W, Ci_pad) bf16 with
    channels already zero-padded to a multiple of 128.  Returns
    (N, Ho, Wo, Co_pad) bf16 (padded channels are exactly zero)."""
    w, gamma, beta, r_mean, r_var, eps = params
    Cout, Cin, Kh, Kw = w.shape
    assert Kh == 3 and Kw == 3
    N, H, W, Ci_pad = x_nhwc.shape
    assert Ci_pad == _round_up(Cin, 128)
    Co_pad = _round_up(Cout, 128)
    Ho = (H + 2 - Kh) // 2 + 1
    Wo = (W + 2 - Kw) // 2 + 1

    # One fused XLA pad/reshape/transpose pass over the (bf16) activations.
    x_ph, A, B = _phase_decompose(x_nhwc)

    # Fold BN scale into the conv weights (trace-time constants).
    scale = gamma / jnp.sqrt(r_var + eps)
    shift = (beta - r_mean * scale).astype(jnp.float32).reshape(1, Cout)
    w9 = jnp.transpose(w, (2, 3, 1, 0)).reshape(Kh * Kw, Cin, Cout)
    w9 = w9 * scale[None, None, :]
    w9 = jnp.pad(w9, ((0, 0), (0, Ci_pad - Cin), (0, Co_pad - Cout)))
    w9 = w9.astype(jnp.bfloat16)
    shift = jnp.pad(shift, ((0, 0), (0, Co_pad - Cout)))

    kernel = _make_conv_bn_kernel(Ho, Wo, A, Ci_pad, Co_pad)

    flops = 2 * N * Ho * Wo * 9 * Ci_pad * Co_pad
    bytes_accessed = (N * 4 * A * B * Ci_pad * 2 + 9 * Ci_pad * Co_pad * 2
                      + Co_pad * 4 + N * Ho * Wo * Co_pad * 2)
    # Tight VMEM budget: double-buffered per-step x/out tiles + resident
    # weight/shift + headroom for compiler scratch.  ~3 MB at the test sizes;
    # re-check against 64 MiB per-TC on v7x before scaling tiles up.
    x_tile = 4 * A * _round_up(B, 16) * Ci_pad * 2
    o_tile = _round_up(Ho * Wo, 16) * Co_pad * 2
    w_bytes = 9 * Ci_pad * Co_pad * 2
    b_bytes = 8 * Co_pad * 4
    vmem_bytes = int(2 * (x_tile + o_tile) + 2 * (w_bytes + b_bytes) + (2 << 20))

    out = pl.pallas_call(
        kernel,
        out_shape=jax.ShapeDtypeStruct((N, Ho * Wo, Co_pad), jnp.bfloat16),
        grid_spec=pltpu.PrefetchScalarGridSpec(
            num_scalar_prefetch=0,
            grid=(N,),
            in_specs=[
                pl.BlockSpec((1, 4 * A, B, Ci_pad), lambda n: (n, 0, 0, 0)),
                # Weight / shift: constant block index -> fetched once, VMEM
                # resident across the whole (parallel) grid.
                pl.BlockSpec((Kh * Kw, Ci_pad, Co_pad), lambda n: (0, 0, 0)),
                pl.BlockSpec((1, Co_pad), lambda n: (0, 0)),
            ],
            out_specs=pl.BlockSpec((1, Ho * Wo, Co_pad), lambda n: (n, 0, 0)),
        ),
        compiler_params=pltpu.CompilerParams(
            dimension_semantics=("parallel",),
            vmem_limit_bytes=vmem_bytes,
        ),
        cost_estimate=pl.CostEstimate(
            flops=flops, transcendentals=0, bytes_accessed=bytes_accessed),
    )(x_ph, w9, shift)

    return out.reshape(N, Ho, Wo, Co_pad)


# ---------------------------------------------------------------------------
# Forward: stacked stride-2 ReLUConvBN layers (FPN extra/downsample path)
# ---------------------------------------------------------------------------
def fpn_extra_layers_forward(p_nchw, layer_params):
    """p_nchw: (N, C, H, W). Returns tuple of NCHW f32 maps, one per layer."""
    N, C, H, W = p_nchw.shape
    C_pad = _round_up(C, 128)
    # NCHW -> NHWC once, cast bf16, zero-pad channels to 128 lanes; the chain
    # then stays in padded bf16 NHWC between layers.
    x = jnp.transpose(p_nchw, (0, 2, 3, 1)).astype(jnp.bfloat16)
    x = jnp.pad(x, ((0, 0), (0, 0), (0, 0), (0, C_pad - C)))
    outs = []
    for params in layer_params:
        x = _relu_conv_bn_layer(x, params)          # (N, Ho, Wo, Co_pad) bf16
        Cout = params[0].shape[0]
        outs.append(jnp.transpose(x[..., :Cout], (0, 3, 1, 2)).astype(jnp.float32))
    return tuple(outs)


def init_fpn_extra_layers(key, in_channels, f_channels, num_extra=2, eps=1e-5):
    """Deterministic synthetic params for each ReLUConvBN layer."""
    params = []
    c_in = in_channels
    for _ in range(num_extra):
        key, kw, kg, kb, km, kv = jax.random.split(key, 6)
        w = jax.random.normal(kw, (f_channels, c_in, 3, 3), jnp.float32) * 0.1
        gamma = 1.0 + 0.1 * jax.random.normal(kg, (f_channels,), jnp.float32)
        beta = 0.1 * jax.random.normal(kb, (f_channels,), jnp.float32)
        r_mean = 0.05 * jax.random.normal(km, (f_channels,), jnp.float32)
        r_var = jnp.abs(jax.random.normal(kv, (f_channels,), jnp.float32)) + 0.5
        params.append((w, gamma, beta, r_mean, r_var, eps))
        c_in = f_channels
    return params


if __name__ == "__main__":
    key = jax.random.PRNGKey(0)
    k_in, k_params = jax.random.split(key)

    N, Cin, H, W = 2, 4, 16, 16
    f_channels = 32

    x = jax.random.normal(k_in, (N, Cin, H, W), jnp.float32)
    layer_params = init_fpn_extra_layers(k_params, Cin, f_channels, num_extra=2)

    fwd = jax.jit(functools.partial(fpn_extra_layers_forward,
                                    layer_params=layer_params))
    p6, p7 = fwd(x)
    jax.block_until_ready((p6, p7))

    assert p6.shape == (N, f_channels, H // 2, W // 2)
    assert p7.shape == (N, f_channels, H // 4, W // 4)

    # Sanity check against a pure-JAX f32 reference (lax conv). Tolerance is
    # loose because the kernel keeps bf16 activations/weights (f32 accum).
    def ref_layer(x_nchw, params):
        w, gamma, beta, r_mean, r_var, eps = params
        y = jax.lax.conv_general_dilated(
            jnp.maximum(x_nchw, 0.0), w, window_strides=(2, 2),
            padding=((1, 1), (1, 1)),
            dimension_numbers=("NCHW", "OIHW", "NCHW"))
        scale = gamma / jnp.sqrt(r_var + eps)
        shift = beta - r_mean * scale
        return y * scale[None, :, None, None] + shift[None, :, None, None]

    r = x
    refs = []
    for prm in layer_params:
        r = ref_layer(r, prm)
        refs.append(r)
    assert jnp.allclose(p6, refs[0], atol=5e-2, rtol=5e-2)
    assert jnp.allclose(p7, refs[1], atol=5e-2, rtol=5e-2)

    print("KERNEL_OK")
</pallas_src>

<mosaic_0001>
module attributes {stable_mosaic.version = 11 : i64} {
  func.func @kernel(%arg0: i32, %arg1: memref<1x36x9x128xbf16, #tpu.memory_space<vmem>>, %arg2: memref<9x128x128xbf16, #tpu.memory_space<vmem>>, %arg3: memref<1x128xf32, #tpu.memory_space<vmem>>, %arg4: memref<1x64x128xbf16, #tpu.memory_space<vmem>>) attributes {dimension_semantics = [#tpu.dimension_semantics<parallel>], iteration_bounds = array<i64: 2>, scalar_prefetch = 0 : i64, scratch_operands = 0 : i64, tpu.core_type = #tpu.core_type<tc>, window_params = [{transform_indices = @transform_0, window_bounds = array<i64: 1, 36, 9, 128>}, {pipeline_mode = #tpu.pipeline_mode<synchronous>, transform_indices = @transform_1, window_bounds = array<i64: 9, 128, 128>}, {pipeline_mode = #tpu.pipeline_mode<synchronous>, transform_indices = @transform_2, window_bounds = array<i64: 1, 128>}, {transform_indices = @transform_3, window_bounds = array<i64: 1, 64, 128>}]} {
    %cst = arith.constant 0.000000e+00 : f32
    %0 = vector.broadcast %cst : f32 to vector<64x128xf32>
    %c0 = arith.constant 0 : index
    %c0_0 = arith.constant 0 : index
    %c0_1 = arith.constant 0 : index
    %c0_2 = arith.constant 0 : index
    %1 = vector.load %arg1[%c0, %c0_0, %c0_1, %c0_2] : memref<1x36x9x128xbf16, #tpu.memory_space<vmem>>, vector<1x8x8x128xbf16>
    %2 = vector.shape_cast %1 : vector<1x8x8x128xbf16> to vector<8x8x128xbf16>
    %cst_3 = arith.constant 0.000000e+00 : bf16
    %3 = vector.broadcast %cst_3 : bf16 to vector<8x8x128xbf16>
    %4 = arith.maximumf %2, %3 : vector<8x8x128xbf16>
    %5 = vector.shape_cast %4 : vector<8x8x128xbf16> to vector<64x128xbf16>
    %c0_4 = arith.constant 0 : index
    %c0_5 = arith.constant 0 : index
    %c0_6 = arith.constant 0 : index
    %6 = vector.load %arg2[%c0_4, %c0_5, %c0_6] : memref<9x128x128xbf16, #tpu.memory_space<vmem>>, vector<1x128x128xbf16>
    %7 = vector.shape_cast %6 : vector<1x128x128xbf16> to vector<128x128xbf16>
    %cst_7 = arith.constant dense<0.000000e+00> : vector<64x128xf32>
    %8 = tpu.matmul %5, %7, %cst_7 {dimension_numbers = #tpu.dot_dimension_numbers<[1], [0], [0], [1], [0, 0, 1, 1], [], []>} : vector<64x128xbf16>, vector<128x128xbf16>, vector<64x128xf32> -> vector<64x128xf32>
    %9 = arith.addf %0, %8 : vector<64x128xf32>
    %c0_8 = arith.constant 0 : index
    %c9 = arith.constant 9 : index
    %c0_9 = arith.constant 0 : index
    %c0_10 = arith.constant 0 : index
    %10 = vector.load %arg1[%c0_8, %c9, %c0_9, %c0_10] : memref<1x36x9x128xbf16, #tpu.memory_space<vmem>>, vector<1x8x8x128xbf16>
    %11 = vector.shape_cast %10 : vector<1x8x8x128xbf16> to vector<8x8x128xbf16>
    %cst_11 = arith.constant 0.000000e+00 : bf16
    %12 = vector.broadcast %cst_11 : bf16 to vector<8x8x128xbf16>
    %13 = arith.maximumf %11, %12 : vector<8x8x128xbf16>
    %14 = vector.shape_cast %13 : vector<8x8x128xbf16> to vector<64x128xbf16>
    %c1 = arith.constant 1 : index
    %c0_12 = arith.constant 0 : index
    %c0_13 = arith.constant 0 : index
    %15 = vector.load %arg2[%c1, %c0_12, %c0_13] : memref<9x128x128xbf16, #tpu.memory_space<vmem>>, vector<1x128x128xbf16>
    %16 = vector.shape_cast %15 : vector<1x128x128xbf16> to vector<128x128xbf16>
    %cst_14 = arith.constant dense<0.000000e+00> : vector<64x128xf32>
    %17 = tpu.matmul %14, %16, %cst_14 {dimension_numbers = #tpu.dot_dimension_numbers<[1], [0], [0], [1], [0, 0, 1, 1], [], []>} : vector<64x128xbf16>, vector<128x128xbf16>, vector<64x128xf32> -> vector<64x128xf32>
    %18 = arith.addf %9, %17 : vector<64x128xf32>
    %c0_15 = arith.constant 0 : index
    %c0_16 = arith.constant 0 : index
    %c1_17 = arith.constant 1 : index
    %c0_18 = arith.constant 0 : index
    %19 = vector.load %arg1[%c0_15, %c0_16, %c1_17, %c0_18] : memref<1x36x9x128xbf16, #tpu.memory_space<vmem>>, vector<1x8x8x128xbf16>
    %20 = vector.shape_cast %19 : vector<1x8x8x128xbf16> to vector<8x8x128xbf16>
    %cst_19 = arith.constant 0.000000e+00 : bf16
    %21 = vector.broadcast %cst_19 : bf16 to vector<8x8x128xbf16>
    %22 = arith.maximumf %20, %21 : vector<8x8x128xbf16>
    %23 = vector.shape_cast %22 : vector<8x8x128xbf16> to vector<64x128xbf16>
    %c2 = arith.constant 2 : index
    %c0_20 = arith.constant 0 : index
    %c0_21 = arith.constant 0 : index
    %24 = vector.load %arg2[%c2, %c0_20, %c0_21] : memref<9x128x128xbf16, #tpu.memory_space<vmem>>, vector<1x128x128xbf16>
    %25 = vector.shape_cast %24 : vector<1x128x128xbf16> to vector<128x128xbf16>
    %cst_22 = arith.constant dense<0.000000e+00> : vector<64x128xf32>
    %26 = tpu.matmul %23, %25, %cst_22 {dimension_numbers = #tpu.dot_dimension_numbers<[1], [0], [0], [1], [0, 0, 1, 1], [], []>} : vector<64x128xbf16>, vector<128x128xbf16>, vector<64x128xf32> -> vector<64x128xf32>
    %27 = arith.addf %18, %26 : vector<64x128xf32>
    %c0_23 = arith.constant 0 : index
    %c18 = arith.constant 18 : index
    %c0_24 = arith.constant 0 : index
    %c0_25 = arith.constant 0 : index
    %28 = vector.load %arg1[%c0_23, %c18, %c0_24, %c0_25] : memref<1x36x9x128xbf16, #tpu.memory_space<vmem>>, vector<1x8x8x128xbf16>
    %29 = vector.shape_cast %28 : vector<1x8x8x128xbf16> to vector<8x8x128xbf16>
    %cst_26 = arith.constant 0.000000e+00 : bf16
    %30 = vector.broadcast %cst_26 : bf16 to vector<8x8x128xbf16>
    %31 = arith.maximumf %29, %30 : vector<8x8x128xbf16>
    %32 = vector.shape_cast %31 : vector<8x8x128xbf16> to vector<64x128xbf16>
    %c3 = arith.constant 3 : index
    %c0_27 = arith.constant 0 : index
    %c0_28 = arith.constant 0 : index
    %33 = vector.load %arg2[%c3, %c0_27, %c0_28] : memref<9x128x128xbf16, #tpu.memory_space<vmem>>, vector<1x128x128xbf16>
    %34 = vector.shape_cast %33 : vector<1x128x128xbf16> to vector<128x128xbf16>
    %cst_29 = arith.constant dense<0.000000e+00> : vector<64x128xf32>
    %35 = tpu.matmul %32, %34, %cst_29 {dimension_numbers = #tpu.dot_dimension_numbers<[1], [0], [0], [1], [0, 0, 1, 1], [], []>} : vector<64x128xbf16>, vector<128x128xbf16>, vector<64x128xf32> -> vector<64x128xf32>
    %36 = arith.addf %27, %35 : vector<64x128xf32>
    %c0_30 = arith.constant 0 : index
    %c27 = arith.constant 27 : index
    %c0_31 = arith.constant 0 : index
    %c0_32 = arith.constant 0 : index
    %37 = vector.load %arg1[%c0_30, %c27, %c0_31, %c0_32] : memref<1x36x9x128xbf16, #tpu.memory_space<vmem>>, vector<1x8x8x128xbf16>
    %38 = vector.shape_cast %37 : vector<1x8x8x128xbf16> to vector<8x8x128xbf16>
    %cst_33 = arith.constant 0.000000e+00 : bf16
    %39 = vector.broadcast %cst_33 : bf16 to vector<8x8x128xbf16>
    %40 = arith.maximumf %38, %39 : vector<8x8x128xbf16>
    %41 = vector.shape_cast %40 : vector<8x8x128xbf16> to vector<64x128xbf16>
    %c4 = arith.constant 4 : index
    %c0_34 = arith.constant 0 : index
    %c0_35 = arith.constant 0 : index
    %42 = vector.load %arg2[%c4, %c0_34, %c0_35] : memref<9x128x128xbf16, #tpu.memory_space<vmem>>, vector<1x128x128xbf16>
    %43 = vector.shape_cast %42 : vector<1x128x128xbf16> to vector<128x128xbf16>
    %cst_36 = arith.constant dense<0.000000e+00> : vector<64x128xf32>
    %44 = tpu.matmul %41, %43, %cst_36 {dimension_numbers = #tpu.dot_dimension_numbers<[1], [0], [0], [1], [0, 0, 1, 1], [], []>} : vector<64x128xbf16>, vector<128x128xbf16>, vector<64x128xf32> -> vector<64x128xf32>
    %45 = arith.addf %36, %44 : vector<64x128xf32>
    %c0_37 = arith.constant 0 : index
    %c18_38 = arith.constant 18 : index
    %c1_39 = arith.constant 1 : index
    %c0_40 = arith.constant 0 : index
    %46 = vector.load %arg1[%c0_37, %c18_38, %c1_39, %c0_40] : memref<1x36x9x128xbf16, #tpu.memory_space<vmem>>, vector<1x8x8x128xbf16>
    %47 = vector.shape_cast %46 : vector<1x8x8x128xbf16> to vector<8x8x128xbf16>
    %cst_41 = arith.constant 0.000000e+00 : bf16
    %48 = vector.broadcast %cst_41 : bf16 to vector<8x8x128xbf16>
    %49 = arith.maximumf %47, %48 : vector<8x8x128xbf16>
    %50 = vector.shape_cast %49 : vector<8x8x128xbf16> to vector<64x128xbf16>
    %c5 = arith.constant 5 : index
    %c0_42 = arith.constant 0 : index
    %c0_43 = arith.constant 0 : index
    %51 = vector.load %arg2[%c5, %c0_42, %c0_43] : memref<9x128x128xbf16, #tpu.memory_space<vmem>>, vector<1x128x128xbf16>
    %52 = vector.shape_cast %51 : vector<1x128x128xbf16> to vector<128x128xbf16>
    %cst_44 = arith.constant dense<0.000000e+00> : vector<64x128xf32>
    %53 = tpu.matmul %50, %52, %cst_44 {dimension_numbers = #tpu.dot_dimension_numbers<[1], [0], [0], [1], [0, 0, 1, 1], [], []>} : vector<64x128xbf16>, vector<128x128xbf16>, vector<64x128xf32> -> vector<64x128xf32>
    %54 = arith.addf %45, %53 : vector<64x128xf32>
    %c0_45 = arith.constant 0 : index
    %c1_46 = arith.constant 1 : index
    %c0_47 = arith.constant 0 : index
    %c0_48 = arith.constant 0 : index
    %55 = vector.load %arg1[%c0_45, %c1_46, %c0_47, %c0_48] : memref<1x36x9x128xbf16, #tpu.memory_space<vmem>>, vector<1x8x8x128xbf16>
    %56 = vector.shape_cast %55 : vector<1x8x8x128xbf16> to vector<8x8x128xbf16>
    %cst_49 = arith.constant 0.000000e+00 : bf16
    %57 = vector.broadcast %cst_49 : bf16 to vector<8x8x128xbf16>
    %58 = arith.maximumf %56, %57 : vector<8x8x128xbf16>
    %59 = vector.shape_cast %58 : vector<8x8x128xbf16> to vector<64x128xbf16>
    %c6 = arith.constant 6 : index
    %c0_50 = arith.constant 0 : index
    %c0_51 = arith.constant 0 : index
    %60 = vector.load %arg2[%c6, %c0_50, %c0_51] : memref<9x128x128xbf16, #tpu.memory_space<vmem>>, vector<1x128x128xbf16>
    %61 = vector.shape_cast %60 : vector<1x128x128xbf16> to vector<128x128xbf16>
    %cst_52 = arith.constant dense<0.000000e+00> : vector<64x128xf32>
    %62 = tpu.matmul %59, %61, %cst_52 {dimension_numbers = #tpu.dot_dimension_numbers<[1], [0], [0], [1], [0, 0, 1, 1], [], []>} : vector<64x128xbf16>, vector<128x128xbf16>, vector<64x128xf32> -> vector<64x128xf32>
    %63 = arith.addf %54, %62 : vector<64x128xf32>
    %c0_53 = arith.constant 0 : index
    %c10 = arith.constant 10 : index
    %c0_54 = arith.constant 0 : index
    %c0_55 = arith.constant 0 : index
    %64 = vector.load %arg1[%c0_53, %c10, %c0_54, %c0_55] : memref<1x36x9x128xbf16, #tpu.memory_space<vmem>>, vector<1x8x8x128xbf16>
    %65 = vector.shape_cast %64 : vector<1x8x8x128xbf16> to vector<8x8x128xbf16>
    %cst_56 = arith.constant 0.000000e+00 : bf16
    %66 = vector.broadcast %cst_56 : bf16 to vector<8x8x128xbf16>
    %67 = arith.maximumf %65, %66 : vector<8x8x128xbf16>
    %68 = vector.shape_cast %67 : vector<8x8x128xbf16> to vector<64x128xbf16>
    %c7 = arith.constant 7 : index
    %c0_57 = arith.constant 0 : index
    %c0_58 = arith.constant 0 : index
    %69 = vector.load %arg2[%c7, %c0_57, %c0_58] : memref<9x128x128xbf16, #tpu.memory_space<vmem>>, vector<1x128x128xbf16>
    %70 = vector.shape_cast %69 : vector<1x128x128xbf16> to vector<128x128xbf16>
    %cst_59 = arith.constant dense<0.000000e+00> : vector<64x128xf32>
    %71 = tpu.matmul %68, %70, %cst_59 {dimension_numbers = #tpu.dot_dimension_numbers<[1], [0], [0], [1], [0, 0, 1, 1], [], []>} : vector<64x128xbf16>, vector<128x128xbf16>, vector<64x128xf32> -> vector<64x128xf32>
    %72 = arith.addf %63, %71 : vector<64x128xf32>
    %c0_60 = arith.constant 0 : index
    %c1_61 = arith.constant 1 : index
    %c1_62 = arith.constant 1 : index
    %c0_63 = arith.constant 0 : index
    %73 = vector.load %arg1[%c0_60, %c1_61, %c1_62, %c0_63] : memref<1x36x9x128xbf16, #tpu.memory_space<vmem>>, vector<1x8x8x128xbf16>
    %74 = vector.shape_cast %73 : vector<1x8x8x128xbf16> to vector<8x8x128xbf16>
    %cst_64 = arith.constant 0.000000e+00 : bf16
    %75 = vector.broadcast %cst_64 : bf16 to vector<8x8x128xbf16>
    %76 = arith.maximumf %74, %75 : vector<8x8x128xbf16>
    %77 = vector.shape_cast %76 : vector<8x8x128xbf16> to vector<64x128xbf16>
    %c8 = arith.constant 8 : index
    %c0_65 = arith.constant 0 : index
    %c0_66 = arith.constant 0 : index
    %78 = vector.load %arg2[%c8, %c0_65, %c0_66] : memref<9x128x128xbf16, #tpu.memory_space<vmem>>, vector<1x128x128xbf16>
    %79 = vector.shape_cast %78 : vector<1x128x128xbf16> to vector<128x128xbf16>
    %cst_67 = arith.constant dense<0.000000e+00> : vector<64x128xf32>
    %80 = tpu.matmul %77, %79, %cst_67 {dimension_numbers = #tpu.dot_dimension_numbers<[1], [0], [0], [1], [0, 0, 1, 1], [], []>} : vector<64x128xbf16>, vector<128x128xbf16>, vector<64x128xf32> -> vector<64x128xf32>
    %81 = arith.addf %72, %80 : vector<64x128xf32>
    %c0_68 = arith.constant 0 : index
    %c0_69 = arith.constant 0 : index
    %82 = vector.load %arg3[%c0_68, %c0_69] : memref<1x128xf32, #tpu.memory_space<vmem>>, vector<1x128xf32>
    %83 = vector.broadcast %82 : vector<1x128xf32> to vector<64x128xf32>
    %84 = arith.addf %81, %83 : vector<64x128xf32>
    %85 = arith.truncf %84 : vector<64x128xf32> to vector<64x128xbf16>
    %c0_70 = arith.constant 0 : index
    %c0_71 = arith.constant 0 : index
    %c0_72 = arith.constant 0 : index
    %86 = vector.load %arg4[%c0_70, %c0_71, %c0_72] : memref<1x64x128xbf16, #tpu.memory_space<vmem>>, vector<1x64x128xbf16>
    %87 = vector.shape_cast %86 : vector<1x64x128xbf16> to vector<64x128xbf16>
    %88 = vector.shape_cast %85 : vector<64x128xbf16> to vector<1x64x128xbf16>
    tpu.vector_store %arg4[%c0_70, %c0_71, %c0_72], %88 {strides = array<i32>} : memref<1x64x128xbf16, #tpu.memory_space<vmem>>, vector<1x64x128xbf16>,
    return
  }
  func.func @transform_0(%arg0: i32) -> (i32, i32, i32, i32) {
    %c0_i32 = arith.constant 0 : i32
    %c0_i32_0 = arith.constant 0 : i32
    %c0_i32_1 = arith.constant 0 : i32
    %c0_i32_2 = arith.constant 0 : i32
    return %arg0, %c0_i32, %c0_i32_0, %c0_i32_1 : i32, i32, i32, i32
  }
  func.func @transform_1(%arg0: i32) -> (i32, i32, i32) {
    %c0_i32 = arith.constant 0 : i32
    %c0_i32_0 = arith.constant 0 : i32
    %c0_i32_1 = arith.constant 0 : i32
    %c0_i32_2 = arith.constant 0 : i32
    return %c0_i32, %c0_i32_0, %c0_i32_1 : i32, i32, i32
  }
  func.func @transform_2(%arg0: i32) -> (i32, i32) {
    %c0_i32 = arith.constant 0 : i32
    %c0_i32_0 = arith.constant 0 : i32
    %c0_i32_1 = arith.constant 0 : i32
    return %c0_i32, %c0_i32_0 : i32, i32
  }
  func.func @transform_3(%arg0: i32) -> (i32, i32, i32) {
    %c0_i32 = arith.constant 0 : i32
    %c0_i32_0 = arith.constant 0 : i32
    %c0_i32_1 = arith.constant 0 : i32
    return %arg0, %c0_i32, %c0_i32_0 : i32, i32, i32
  }
}

module attributes {stable_mosaic.version = 11 : i64} {
  func.func @kernel(%arg0: i32, %arg1: memref<1x20x5x128xbf16, #tpu.memory_space<vmem>>, %arg2: memref<9x128x128xbf16, #tpu.memory_space<vmem>>, %arg3: memref<1x128xf32, #tpu.memory_space<vmem>>, %arg4: memref<1x16x128xbf16, #tpu.memory_space<vmem>>) attributes {dimension_semantics = [#tpu.dimension_semantics<parallel>], iteration_bounds = array<i64: 2>, scalar_prefetch = 0 : i64, scratch_operands = 0 : i64, tpu.core_type = #tpu.core_type<tc>, window_params = [{transform_indices = @transform_0, window_bounds = array<i64: 1, 20, 5, 128>}, {pipeline_mode = #tpu.pipeline_mode<synchronous>, transform_indices = @transform_1, window_bounds = array<i64: 9, 128, 128>}, {pipeline_mode = #tpu.pipeline_mode<synchronous>, transform_indices = @transform_2, window_bounds = array<i64: 1, 128>}, {transform_indices = @transform_3, window_bounds = array<i64: 1, 16, 128>}]} {
    %cst = arith.constant 0.000000e+00 : f32
    %0 = vector.broadcast %cst : f32 to vector<16x128xf32>
    %c0 = arith.constant 0 : index
    %c0_0 = arith.constant 0 : index
    %c0_1 = arith.constant 0 : index
    %c0_2 = arith.constant 0 : index
    %1 = vector.load %arg1[%c0, %c0_0, %c0_1, %c0_2] : memref<1x20x5x128xbf16, #tpu.memory_space<vmem>>, vector<1x4x4x128xbf16>
    %2 = vector.shape_cast %1 : vector<1x4x4x128xbf16> to vector<4x4x128xbf16>
    %cst_3 = arith.constant 0.000000e+00 : bf16
    %3 = vector.broadcast %cst_3 : bf16 to vector<4x4x128xbf16>
    %4 = arith.maximumf %2, %3 : vector<4x4x128xbf16>
    %5 = vector.shape_cast %4 : vector<4x4x128xbf16> to vector<16x128xbf16>
    %c0_4 = arith.constant 0 : index
    %c0_5 = arith.constant 0 : index
    %c0_6 = arith.constant 0 : index
    %6 = vector.load %arg2[%c0_4, %c0_5, %c0_6] : memref<9x128x128xbf16, #tpu.memory_space<vmem>>, vector<1x128x128xbf16>
    %7 = vector.shape_cast %6 : vector<1x128x128xbf16> to vector<128x128xbf16>
    %cst_7 = arith.constant dense<0.000000e+00> : vector<16x128xf32>
    %8 = tpu.matmul %5, %7, %cst_7 {dimension_numbers = #tpu.dot_dimension_numbers<[1], [0], [0], [1], [0, 0, 1, 1], [], []>} : vector<16x128xbf16>, vector<128x128xbf16>, vector<16x128xf32> -> vector<16x128xf32>
    %9 = arith.addf %0, %8 : vector<16x128xf32>
    %c0_8 = arith.constant 0 : index
    %c5 = arith.constant 5 : index
    %c0_9 = arith.constant 0 : index
    %c0_10 = arith.constant 0 : index
    %10 = vector.load %arg1[%c0_8, %c5, %c0_9, %c0_10] : memref<1x20x5x128xbf16, #tpu.memory_space<vmem>>, vector<1x4x4x128xbf16>
    %11 = vector.shape_cast %10 : vector<1x4x4x128xbf16> to vector<4x4x128xbf16>
    %cst_11 = arith.constant 0.000000e+00 : bf16
    %12 = vector.broadcast %cst_11 : bf16 to vector<4x4x128xbf16>
    %13 = arith.maximumf %11, %12 : vector<4x4x128xbf16>
    %14 = vector.shape_cast %13 : vector<4x4x128xbf16> to vector<16x128xbf16>
    %c1 = arith.constant 1 : index
    %c0_12 = arith.constant 0 : index
    %c0_13 = arith.constant 0 : index
    %15 = vector.load %arg2[%c1, %c0_12, %c0_13] : memref<9x128x128xbf16, #tpu.memory_space<vmem>>, vector<1x128x128xbf16>
    %16 = vector.shape_cast %15 : vector<1x128x128xbf16> to vector<128x128xbf16>
    %cst_14 = arith.constant dense<0.000000e+00> : vector<16x128xf32>
    %17 = tpu.matmul %14, %16, %cst_14 {dimension_numbers = #tpu.dot_dimension_numbers<[1], [0], [0], [1], [0, 0, 1, 1], [], []>} : vector<16x128xbf16>, vector<128x128xbf16>, vector<16x128xf32> -> vector<16x128xf32>
    %18 = arith.addf %9, %17 : vector<16x128xf32>
    %c0_15 = arith.constant 0 : index
    %c0_16 = arith.constant 0 : index
    %c1_17 = arith.constant 1 : index
    %c0_18 = arith.constant 0 : index
    %19 = vector.load %arg1[%c0_15, %c0_16, %c1_17, %c0_18] : memref<1x20x5x128xbf16, #tpu.memory_space<vmem>>, vector<1x4x4x128xbf16>
    %20 = vector.shape_cast %19 : vector<1x4x4x128xbf16> to vector<4x4x128xbf16>
    %cst_19 = arith.constant 0.000000e+00 : bf16
    %21 = vector.broadcast %cst_19 : bf16 to vector<4x4x128xbf16>
    %22 = arith.maximumf %20, %21 : vector<4x4x128xbf16>
    %23 = vector.shape_cast %22 : vector<4x4x128xbf16> to vector<16x128xbf16>
    %c2 = arith.constant 2 : index
    %c0_20 = arith.constant 0 : index
    %c0_21 = arith.constant 0 : index
    %24 = vector.load %arg2[%c2, %c0_20, %c0_21] : memref<9x128x128xbf16, #tpu.memory_space<vmem>>, vector<1x128x128xbf16>
    %25 = vector.shape_cast %24 : vector<1x128x128xbf16> to vector<128x128xbf16>
    %cst_22 = arith.constant dense<0.000000e+00> : vector<16x128xf32>
    %26 = tpu.matmul %23, %25, %cst_22 {dimension_numbers = #tpu.dot_dimension_numbers<[1], [0], [0], [1], [0, 0, 1, 1], [], []>} : vector<16x128xbf16>, vector<128x128xbf16>, vector<16x128xf32> -> vector<16x128xf32>
    %27 = arith.addf %18, %26 : vector<16x128xf32>
    %c0_23 = arith.constant 0 : index
    %c10 = arith.constant 10 : index
    %c0_24 = arith.constant 0 : index
    %c0_25 = arith.constant 0 : index
    %28 = vector.load %arg1[%c0_23, %c10, %c0_24, %c0_25] : memref<1x20x5x128xbf16, #tpu.memory_space<vmem>>, vector<1x4x4x128xbf16>
    %29 = vector.shape_cast %28 : vector<1x4x4x128xbf16> to vector<4x4x128xbf16>
    %cst_26 = arith.constant 0.000000e+00 : bf16
    %30 = vector.broadcast %cst_26 : bf16 to vector<4x4x128xbf16>
    %31 = arith.maximumf %29, %30 : vector<4x4x128xbf16>
    %32 = vector.shape_cast %31 : vector<4x4x128xbf16> to vector<16x128xbf16>
    %c3 = arith.constant 3 : index
    %c0_27 = arith.constant 0 : index
    %c0_28 = arith.constant 0 : index
    %33 = vector.load %arg2[%c3, %c0_27, %c0_28] : memref<9x128x128xbf16, #tpu.memory_space<vmem>>, vector<1x128x128xbf16>
    %34 = vector.shape_cast %33 : vector<1x128x128xbf16> to vector<128x128xbf16>
    %cst_29 = arith.constant dense<0.000000e+00> : vector<16x128xf32>
    %35 = tpu.matmul %32, %34, %cst_29 {dimension_numbers = #tpu.dot_dimension_numbers<[1], [0], [0], [1], [0, 0, 1, 1], [], []>} : vector<16x128xbf16>, vector<128x128xbf16>, vector<16x128xf32> -> vector<16x128xf32>
    %36 = arith.addf %27, %35 : vector<16x128xf32>
    %c0_30 = arith.constant 0 : index
    %c15 = arith.constant 15 : index
    %c0_31 = arith.constant 0 : index
    %c0_32 = arith.constant 0 : index
    %37 = vector.load %arg1[%c0_30, %c15, %c0_31, %c0_32] : memref<1x20x5x128xbf16, #tpu.memory_space<vmem>>, vector<1x4x4x128xbf16>
    %38 = vector.shape_cast %37 : vector<1x4x4x128xbf16> to vector<4x4x128xbf16>
    %cst_33 = arith.constant 0.000000e+00 : bf16
    %39 = vector.broadcast %cst_33 : bf16 to vector<4x4x128xbf16>
    %40 = arith.maximumf %38, %39 : vector<4x4x128xbf16>
    %41 = vector.shape_cast %40 : vector<4x4x128xbf16> to vector<16x128xbf16>
    %c4 = arith.constant 4 : index
    %c0_34 = arith.constant 0 : index
    %c0_35 = arith.constant 0 : index
    %42 = vector.load %arg2[%c4, %c0_34, %c0_35] : memref<9x128x128xbf16, #tpu.memory_space<vmem>>, vector<1x128x128xbf16>
    %43 = vector.shape_cast %42 : vector<1x128x128xbf16> to vector<128x128xbf16>
    %cst_36 = arith.constant dense<0.000000e+00> : vector<16x128xf32>
    %44 = tpu.matmul %41, %43, %cst_36 {dimension_numbers = #tpu.dot_dimension_numbers<[1], [0], [0], [1], [0, 0, 1, 1], [], []>} : vector<16x128xbf16>, vector<128x128xbf16>, vector<16x128xf32> -> vector<16x128xf32>
    %45 = arith.addf %36, %44 : vector<16x128xf32>
    %c0_37 = arith.constant 0 : index
    %c10_38 = arith.constant 10 : index
    %c1_39 = arith.constant 1 : index
    %c0_40 = arith.constant 0 : index
    %46 = vector.load %arg1[%c0_37, %c10_38, %c1_39, %c0_40] : memref<1x20x5x128xbf16, #tpu.memory_space<vmem>>, vector<1x4x4x128xbf16>
    %47 = vector.shape_cast %46 : vector<1x4x4x128xbf16> to vector<4x4x128xbf16>
    %cst_41 = arith.constant 0.000000e+00 : bf16
    %48 = vector.broadcast %cst_41 : bf16 to vector<4x4x128xbf16>
    %49 = arith.maximumf %47, %48 : vector<4x4x128xbf16>
    %50 = vector.shape_cast %49 : vector<4x4x128xbf16> to vector<16x128xbf16>
    %c5_42 = arith.constant 5 : index
    %c0_43 = arith.constant 0 : index
    %c0_44 = arith.constant 0 : index
    %51 = vector.load %arg2[%c5_42, %c0_43, %c0_44] : memref<9x128x128xbf16, #tpu.memory_space<vmem>>, vector<1x128x128xbf16>
    %52 = vector.shape_cast %51 : vector<1x128x128xbf16> to vector<128x128xbf16>
    %cst_45 = arith.constant dense<0.000000e+00> : vector<16x128xf32>
    %53 = tpu.matmul %50, %52, %cst_45 {dimension_numbers = #tpu.dot_dimension_numbers<[1], [0], [0], [1], [0, 0, 1, 1], [], []>} : vector<16x128xbf16>, vector<128x128xbf16>, vector<16x128xf32> -> vector<16x128xf32>
    %54 = arith.addf %45, %53 : vector<16x128xf32>
    %c0_46 = arith.constant 0 : index
    %c1_47 = arith.constant 1 : index
    %c0_48 = arith.constant 0 : index
    %c0_49 = arith.constant 0 : index
    %55 = vector.load %arg1[%c0_46, %c1_47, %c0_48, %c0_49] : memref<1x20x5x128xbf16, #tpu.memory_space<vmem>>, vector<1x4x4x128xbf16>
    %56 = vector.shape_cast %55 : vector<1x4x4x128xbf16> to vector<4x4x128xbf16>
    %cst_50 = arith.constant 0.000000e+00 : bf16
    %57 = vector.broadcast %cst_50 : bf16 to vector<4x4x128xbf16>
    %58 = arith.maximumf %56, %57 : vector<4x4x128xbf16>
    %59 = vector.shape_cast %58 : vector<4x4x128xbf16> to vector<16x128xbf16>
    %c6 = arith.constant 6 : index
    %c0_51 = arith.constant 0 : index
    %c0_52 = arith.constant 0 : index
    %60 = vector.load %arg2[%c6, %c0_51, %c0_52] : memref<9x128x128xbf16, #tpu.memory_space<vmem>>, vector<1x128x128xbf16>
    %61 = vector.shape_cast %60 : vector<1x128x128xbf16> to vector<128x128xbf16>
    %cst_53 = arith.constant dense<0.000000e+00> : vector<16x128xf32>
    %62 = tpu.matmul %59, %61, %cst_53 {dimension_numbers = #tpu.dot_dimension_numbers<[1], [0], [0], [1], [0, 0, 1, 1], [], []>} : vector<16x128xbf16>, vector<128x128xbf16>, vector<16x128xf32> -> vector<16x128xf32>
    %63 = arith.addf %54, %62 : vector<16x128xf32>
    %c0_54 = arith.constant 0 : index
    %c6_55 = arith.constant 6 : index
    %c0_56 = arith.constant 0 : index
    %c0_57 = arith.constant 0 : index
    %64 = vector.load %arg1[%c0_54, %c6_55, %c0_56, %c0_57] : memref<1x20x5x128xbf16, #tpu.memory_space<vmem>>, vector<1x4x4x128xbf16>
    %65 = vector.shape_cast %64 : vector<1x4x4x128xbf16> to vector<4x4x128xbf16>
    %cst_58 = arith.constant 0.000000e+00 : bf16
    %66 = vector.broadcast %cst_58 : bf16 to vector<4x4x128xbf16>
    %67 = arith.maximumf %65, %66 : vector<4x4x128xbf16>
    %68 = vector.shape_cast %67 : vector<4x4x128xbf16> to vector<16x128xbf16>
    %c7 = arith.constant 7 : index
    %c0_59 = arith.constant 0 : index
    %c0_60 = arith.constant 0 : index
    %69 = vector.load %arg2[%c7, %c0_59, %c0_60] : memref<9x128x128xbf16, #tpu.memory_space<vmem>>, vector<1x128x128xbf16>
    %70 = vector.shape_cast %69 : vector<1x128x128xbf16> to vector<128x128xbf16>
    %cst_61 = arith.constant dense<0.000000e+00> : vector<16x128xf32>
    %71 = tpu.matmul %68, %70, %cst_61 {dimension_numbers = #tpu.dot_dimension_numbers<[1], [0], [0], [1], [0, 0, 1, 1], [], []>} : vector<16x128xbf16>, vector<128x128xbf16>, vector<16x128xf32> -> vector<16x128xf32>
    %72 = arith.addf %63, %71 : vector<16x128xf32>
    %c0_62 = arith.constant 0 : index
    %c1_63 = arith.constant 1 : index
    %c1_64 = arith.constant 1 : index
    %c0_65 = arith.constant 0 : index
    %73 = vector.load %arg1[%c0_62, %c1_63, %c1_64, %c0_65] : memref<1x20x5x128xbf16, #tpu.memory_space<vmem>>, vector<1x4x4x128xbf16>
    %74 = vector.shape_cast %73 : vector<1x4x4x128xbf16> to vector<4x4x128xbf16>
    %cst_66 = arith.constant 0.000000e+00 : bf16
    %75 = vector.broadcast %cst_66 : bf16 to vector<4x4x128xbf16>
    %76 = arith.maximumf %74, %75 : vector<4x4x128xbf16>
    %77 = vector.shape_cast %76 : vector<4x4x128xbf16> to vector<16x128xbf16>
    %c8 = arith.constant 8 : index
    %c0_67 = arith.constant 0 : index
    %c0_68 = arith.constant 0 : index
    %78 = vector.load %arg2[%c8, %c0_67, %c0_68] : memref<9x128x128xbf16, #tpu.memory_space<vmem>>, vector<1x128x128xbf16>
    %79 = vector.shape_cast %78 : vector<1x128x128xbf16> to vector<128x128xbf16>
    %cst_69 = arith.constant dense<0.000000e+00> : vector<16x128xf32>
    %80 = tpu.matmul %77, %79, %cst_69 {dimension_numbers = #tpu.dot_dimension_numbers<[1], [0], [0], [1], [0, 0, 1, 1], [], []>} : vector<16x128xbf16>, vector<128x128xbf16>, vector<16x128xf32> -> vector<16x128xf32>
    %81 = arith.addf %72, %80 : vector<16x128xf32>
    %c0_70 = arith.constant 0 : index
    %c0_71 = arith.constant 0 : index
    %82 = vector.load %arg3[%c0_70, %c0_71] : memref<1x128xf32, #tpu.memory_space<vmem>>, vector<1x128xf32>
    %83 = vector.broadcast %82 : vector<1x128xf32> to vector<16x128xf32>
    %84 = arith.addf %81, %83 : vector<16x128xf32>
    %85 = arith.truncf %84 : vector<16x128xf32> to vector<16x128xbf16>
    %c0_72 = arith.constant 0 : index
    %c0_73 = arith.constant 0 : index
    %c0_74 = arith.constant 0 : index
    %86 = vector.load %arg4[%c0_72, %c0_73, %c0_74] : memref<1x16x128xbf16, #tpu.memory_space<vmem>>, vector<1x16x128xbf16>
    %87 = vector.shape_cast %86 : vector<1x16x128xbf16> to vector<16x128xbf16>
    %88 = vector.shape_cast %85 : vector<16x128xbf16> to vector<1x16x128xbf16>
    tpu.vector_store %arg4[%c0_72, %c0_73, %c0_74], %88 {strides = array<i32>} : memref<1x16x128xbf16, #tpu.memory_space<vmem>>, vector<1x16x128xbf16>,
    return
  }
  func.func @transform_0(%arg0: i32) -> (i32, i32, i32, i32) {
    %c0_i32 = arith.constant 0 : i32
    %c0_i32_0 = arith.constant 0 : i32
    %c0_i32_1 = arith.constant 0 : i32
    %c0_i32_2 = arith.constant 0 : i32
    return %arg0, %c0_i32, %c0_i32_0, %c0_i32_1 : i32, i32, i32, i32
  }
  func.func @transform_1(%arg0: i32) -> (i32, i32, i32) {
    %c0_i32 = arith.constant 0 : i32
    %c0_i32_0 = arith.constant 0 : i32
    %c0_i32_1 = arith.constant 0 : i32
    %c0_i32_2 = arith.constant 0 : i32
    return %c0_i32, %c0_i32_0, %c0_i32_1 : i32, i32, i32
  }
  func.func @transform_2(%arg0: i32) -> (i32, i32) {
    %c0_i32 = arith.constant 0 : i32
    %c0_i32_0 = arith.constant 0 : i32
    %c0_i32_1 = arith.constant 0 : i32
    return %c0_i32, %c0_i32_0 : i32, i32
  }
  func.func @transform_3(%arg0: i32) -> (i32, i32, i32) {
    %c0_i32 = arith.constant 0 : i32
    %c0_i32_0 = arith.constant 0 : i32
    %c0_i32_1 = arith.constant 0 : i32
    return %arg0, %c0_i32, %c0_i32_0 : i32, i32, i32
  }
}

</mosaic_0001>

<bundles_post_ra>
// kernel: fpn_extra_layers_forward.3
= control target key start
LH: loop header
LB: loop body
LE: loop exit
PB: predicated region body
PF: predicated region fallthrough
CT: control target
= control target key end

     0   :  { %s2386_s12 = smov 0   ;;  %s2866_s0 = inlined_call_operand.vmem [shape: bf16[2,20,5,128], index: 0, kind: input, shape index: {}]   ;;  %s2867_s1 = inlined_call_operand.vmem [shape: bf16[9,128,128], index: 1, kind: input, shape index: {}]   ;;  %s2868_s2 = inlined_call_operand.vmem [shape: f32[1,128], index: 2, kind: input, shape index: {}]   ;;  %s2869_s3 = inlined_call_operand.vmem [shape: bf16[2,16,128], index: 3, kind: output, shape index: {}]  }
   0x1 LB: > { %s1759_s13 = sadd.s32 4294967295, %s2360_s12   ;;  %p1763_p0 = scmp.ge.s32.totalorder %s2360_s12, 1  ;;  %s2360_s12 = sphi %s2386_s12, %s13_s12  }
   0x2   : > { %p137_p1 = scmp.lt.s32.totalorder %s2360_s12, 3 }
   0x4   : > { %p138_p2 = pnand %p1763_p0, %p137_p1 }
   0x5   : > { %p161_p3 = scmp.lt.s32.totalorder (!%p138_p2), %s1759_s13, 1 }
   0x6   : > { %141 = sbr.rel (%p138_p2) target bundleno = 376 (0x178), region = 32 }
   0xb   : > { %v2282_v0 = vld [vmem:[%s2867_s1 + $0x78] sm:$0xff]   ;;  %v2362_v1 = vmov 0.0   ;;  %v2284_v3 = vld [vmem:[%s2867_s1 + $0x70] sm:$0xff]   ;;  %vm2363_vm0 = vmmov 0   ;;  %s2877_s13 = smov (!%p161_p3, %s1759_s13), 1  ;;  %v2286_v5 = vld [vmem:[%s2867_s1 + $0x68] sm:$0xff]   ;;  %v231_v9 = vlaneseq }
   0xc   : > { %2089 = vmatprep.subr.bf16.mxu0 %v2362_v1  ;;  %2109 = vmatprep.subr.bf16.mxu1 %v2362_v1  ;;  %v2283_v2 = vld [vmem:[%s2867_s1 + $0x38] sm:$0xff]   ;;  %v2285_v4 = vld [vmem:[%s2867_s1 + $0x30] sm:$0xff]   ;;  %v2287_v6 = vld [vmem:[%s2867_s1 + $0x28] sm:$0xff]   ;;  %s2269_s26 = smul.u32 80, %s2877_s13  ;;  %v2364_v18 = vmov 0   ;;  %s2000_s18 = sshll.u32 %s2877_s13, 3 }
   0xd   : > { %2090 = vmatpush3.bf16.msra.mxu0 %v2282_v0  ;;  %2105 = vmatprep.mubr.msk.bf16.mxu0 %vm2363_vm0, %v2362_v1  ;;  %v2288_v7 = vld [vmem:[%s2867_s1 + $0x60] sm:$0xff]   ;;  %v2290_v10 = vld [vmem:[%s2867_s1 + $0x58] sm:$0xff]   ;;  %v232_v12 = vshrl.u32 %v231_v9, 7  ;;  %v2292_v13 = vld [vmem:[%s2867_s1 + $0x50] sm:$0xff]   ;;  %v2365_v24 = vmov 1983009808   ;;  %s170_s21 = scalar_lea.vmem %s2869_s3, %s2000_s18 }
   0xe   : > { %2110 = vmatpush3.bf16.msra.mxu1 %v2283_v2  ;;  %2091 = vmatprep.subr.bf16.mxu0 %v2362_v1  ;;  %v2289_v8 = vld [vmem:[%s2867_s1 + $0x20] sm:$0xff]   ;;  %s2436_s6 = scalar_lea.vmem %s2866_s0, %s2269_s26  ;;  %v2291_v11 = vld [vmem:[%s2867_s1 + $0x18] sm:$0xff]   ;;  %v229_v25 = vunpack.c.l.s4 %v2365_v24  ;;  %v2293_v30 = vld [vmem:[%s2867_s1 + $0x10] sm:$0xff]   ;;  %vm488_vm1 = vsmask.f32 1280 }
   0xf   : > { %2111 = vmatprep.subr.bf16.mxu1 %v2362_v1  ;;  %2125 = vmatprep.mubr.msk.bf16.mxu1 %vm2363_vm0, %v2362_v1  ;;  %v1767_v14 = vld [vmem:[%s2436_s6 + $0x14] sm:$0x3]  ;;  %v1768_v15 = vld [vmem:[%s2436_s6 + $0x18] sm:$0x3]  ;;  %v1769_v16 = vld [vmem:[%s2436_s6 + $0x1c] sm:$0x3] }
  0x10   : > { %v1770_v17 = vld [vmem:[%s2436_s6 + $0x20] sm:$0x3]  ;;  %v201_v19 = vmax.bf16 %v2364_v18, %v1767_v14  ;;  %v202_v20 = vmax.bf16 %v2364_v18, %v1768_v15  ;;  %v203_v21 = vmax.bf16 %v2364_v18, %v1769_v16  ;;  %v173_v26 = vld [vmem:[%s2436_s6 + $0x4] sm:$0x3]  ;;  %v174_v27 = vld [vmem:[%s2436_s6 + $0x8] sm:$0x3]  ;;  %v230_v33 = vunpack.c.0.s8 %v229_v25 }
  0x11   : > { %2092 = vmatpush3.bf16.msra.mxu0 %v2284_v3  ;;  %v172_v22 = vld [vmem:[%s2436_s6] sm:$0x3]  ;;  %v204_v23 = vmax.bf16 %v2364_v18, %v1770_v17  ;;  %v175_v28 = vld [vmem:[%s2436_s6 + $0xc] sm:$0x3]  ;;  %v177_v31 = vmax.bf16 %v2364_v18, %v173_v26  ;;  %v178_v32 = vmax.bf16 %v2364_v18, %v174_v27  ;;  %v2298_v50 = vld [vmem:[%s2867_s1 + $0xb8] sm:$0xff]  }
  0x12   : > { %2112 = vmatpush3.bf16.msra.mxu1 %v2285_v4  ;;  %2093 = vmatprep.subr.bf16.mxu0 %v2362_v1  ;;  %v176_v29 = vmax.bf16 %v2364_v18, %v172_v22  ;;  %v179_v34 = vmax.bf16 %v2364_v18, %v175_v28  ;;  %v226_v35 = vcombine.low %v201_v19, %v202_v20  ;;  %v2294_v37 = vld [vmem:[%s2867_s1 + $0x48] sm:$0xff]   ;;  %v2296_v44 = vld [vmem:[%s2867_s1 + $0x40] sm:$0xff]   ;;  %v2299_v51 = vld [vmem:[%s2867_s1 + $0xf8] sm:$0xff]   ;;  %vm489_vm2 = vsmask.f32 3336 }
  0x13   : > { %2113 = vmatprep.subr.bf16.mxu1 %v2362_v1  ;;  %v227_v36 = vcombine.low %v203_v21, %v204_v23  ;;  %v2473_v38 = vsub.s32 %v230_v33, %v232_v12  ;;  %v2295_v41 = vld [vmem:[%s2867_s1 + $0x8] sm:$0xff]   ;;  %v2297_v47 = vld [vmem:[%s2867_s1] sm:$0xff]   ;;  %v2300_v52 = vld [vmem:[%s2867_s1 + $0xb0] sm:$0xff]   ;;  %vm491_vm3 = vsmask.f32 5392 }
  0x14   : > { %v337_v39 = vcombine.low %v176_v29, %v177_v31  ;;  %v338_v40 = vcombine.low %v178_v32, %v179_v34  ;;  %v2301_v53 = vld [vmem:[%s2867_s1 + $0xf0] sm:$0xff]   ;;  %v444_v54 = vld [vmem:[%s2436_s6] sm:$0x7]  ;;  %v445_v55 = vld [vmem:[%s2436_s6 + $0x4] sm:$0x7] }
  0x15   : > { %2094 = vmatpush3.bf16.msra.mxu0 %v2286_v5  ;;  %v234_v42 = vrot.slane %v226_v35, %v2473_v38  ;;  %v241_v43 = vrot.slane %v227_v36, %v2473_v38  ;;  %v446_v56 = vld [vmem:[%s2436_s6 + $0x8] sm:$0x7]  ;;  %v447_v57 = vld [vmem:[%s2436_s6 + $0xc] sm:$0x7]  ;;  %v448_v58 = vmax.bf16 %v2364_v18, %v444_v54  ;;  %v449_v59 = vmax.bf16 %v2364_v18, %v445_v55  ;;  %v2304_v5 = vld [vmem:[%s2867_s1 + $0xa0] sm:$0xff]  }
  0x16   : > { %2114 = vmatpush3.bf16.msra.mxu1 %v2287_v6  ;;  %2095 = vmatprep.subr.bf16.mxu0 %v2362_v1  ;;  %v345_v45 = vrot.slane %v337_v39, %v2473_v38  ;;  %v352_v46 = vrot.slane %v338_v40, %v2473_v38  ;;  %v450_v60 = vmax.bf16 %v2364_v18, %v446_v56  ;;  %v2302_v62 = vld [vmem:[%s2867_s1 + $0xa8] sm:$0xff]   ;;  %vm493_vm4 = vsmask.f32 7448  ;;  %vm2540_vm5 = vmor %vm488_vm1, %vm489_vm2  ;;  %v2306_v26 = vld [vmem:[%s2867_s1 + $0x98] sm:$0xff]  }
  0x17   : > { %2115 = vmatprep.subr.bf16.mxu1 %v2362_v1  ;;  %v242_v48 = vcombine.low %v234_v42, %v241_v43  ;;  %v451_v61 = vmax.bf16 %v2364_v18, %v447_v57  ;;  %v462_v63 = vrot.slane %v448_v58, %v2473_v38  ;;  %v470_v0 = vrot.slane %v449_v59, %v2473_v38  ;;  %v2303_v3 = vld [vmem:[%s2867_s1 + $0xe8] sm:$0xff]   ;;  %vm2553_vm6 = vmor %vm2540_vm5, %vm491_vm3  ;;  %v1829_v31 = vld [vmem:[%s2436_s6 + $0x30] sm:$0x3] }
  0x18   : > { %v353_v49 = vcombine.low %v345_v45, %v352_v46  ;;  %v478_v2 = vrot.slane %v450_v60, %v2473_v38  ;;  %v1827_v25 = vld [vmem:[%s2436_s6 + $0x28] sm:$0x3]  ;;  %v1830_v36 = vld [vmem:[%s2436_s6 + $0x34] sm:$0x3]  ;;  %v2307_v42 = vld [vmem:[%s2867_s1 + $0xd8] sm:$0xff]   ;;  %v684_v55 = vmax.bf16 %v2364_v18, %v1829_v31 }
  0x19   : > { %2096 = vmatpush3.bf16.msra.mxu0 %v2288_v7  ;;  %v486_v4 = vrot.slane %v451_v61, %v2473_v38  ;;  %v463_v6 = vcombine.high %v462_v63, %v462_v63  ;;  %v471_v7 = vcombine.high %v470_v0, %v470_v0  ;;  %v496_v9 = vshrl.u32 %v462_v63, 16  ;;  %vm2567_vm7 = vmor %vm2553_vm6, %vm493_vm4  ;;  %v2309_v60 = vld [vmem:[%s2867_s1 + $0xd0] sm:$0xff]   ;;  %v2313_v12 = vld [vmem:[%s2867_s1 + $0xc0] sm:$0xff]  }
  0x1a   : > { %2116 = vmatpush3.bf16.msra.mxu1 %v2289_v8  ;;  %2097 = vmatprep.subr.bf16.mxu0 %v2362_v1  ;;  %v479_v8 = vcombine.high %v478_v2, %v478_v2  ;;  %v510_v14 = vshrl.u32 %v470_v0, 16  ;;  %v513_v15 = vshll.u32 %v470_v0, 16  ;;  %v524_v20 = vshrl.u32 %v478_v2, 16  ;;  %v2310_v0 = vld [vmem:[%s2867_s1 + $0x88] sm:$0xff]   ;;  %v2316_v27 = vld [vmem:[%s2867_s1 + $0x130] sm:$0xff]   ;;  %v2353_v43 = vld [vmem:[%s2867_s1 + $0x200] sm:$0xff]  }
  0x1b   : > { %2117 = vmatprep.subr.bf16.mxu1 %v2362_v1  ;;  %v498_v16 = vrot.slane %v496_v9, 6  ;;  %v505_v17 = vshll.u32 %v463_v6, 16  ;;  %v519_v19 = vshll.u32 %v471_v7, 16  ;;  %v527_v24 = vshll.u32 %v478_v2, 16  ;;  %v2312_v9 = vld [vmem:[%s2867_s1 + $0x80] sm:$0xff]  }
  0x1c   : > { %v512_v22 = vrot.slane %v510_v14, 6  ;;  %v515_v23 = vrot.slane %v513_v15, 7  ;;  %v526_v28 = vrot.slane %v524_v20, 6  ;;  %v533_v29 = vshll.u32 %v479_v8, 16  ;;  %v2314_v14 = vld [vmem:[%s2867_s1 + $0x138] sm:$0xff]  }
  0x1d   : > { %2098 = vmatpush3.bf16.msra.mxu0 %v2290_v10  ;;  %v2305_v10 = vld [vmem:[%s2867_s1 + $0xe0] sm:$0xff]   ;;  %v529_v34 = vrot.slane %v527_v24, 7  ;;  %v538_v35 = vshrl.u32 %v486_v4, 16  ;;  %v521_v39 = vrot.slane %v519_v19, 7  ;;  %v541_v40 = vshll.u32 %v486_v4, 16 }
  0x1e   : > { %2118 = vmatpush3.bf16.msra.mxu1 %v2291_v11  ;;  %2099 = vmatprep.subr.bf16.mxu0 %v2362_v1  ;;  %v487_v11 = vcombine.high %v486_v4, %v486_v4  ;;  %v516_v33 = vor.u32 %v515_v23, %v512_v22  ;;  %v685_v59 = vmax.bf16 %v2364_v18, %v1830_v36  ;;  %v1883_v15 = vld [vmem:[%s2436_s6 + $0x28] sm:$0x7]  ;;  %v1885_v19 = vld [vmem:[%s2436_s6 + $0x30] sm:$0x7]  ;;  %v1886_v20 = vld [vmem:[%s2436_s6 + $0x34] sm:$0x7] }
  0x1f   : > { %2119 = vmatprep.subr.bf16.mxu1 %v2362_v1  ;;  %v530_v46 = vor.u32 %v529_v34, %v526_v28  ;;  %v2315_v22 = vld [vmem:[%s2867_s1 + $0x178] sm:$0xff]   ;;  %v961_v24 = vmax.bf16 %v2364_v18, %v1885_v19 }
  0x20   : > { %v517_v45 = vrot.slane %v516_v33, 2  ;;  %v708_v4 = vcombine.low %v684_v55, %v685_v59 }
  0x21   : > { %2100 = vmatpush3.bf16.msra.mxu0 %v2292_v13  ;;  %v499_v13 = vshll.u32 %v462_v63, 16 }
  0x22   : > { %2120 = vmatpush3.bf16.msra.mxu1 %v2293_v30  ;;  %2101 = vmatprep.subr.bf16.mxu0 %v2362_v1  ;;  %v1828_v30 = vld [vmem:[%s2436_s6 + $0x2c] sm:$0x3]  ;;  %v522_v57 = vsel %vm2567_vm7, %v517_v45, %v521_v39 }
  0x23   : > { %2121 = vmatprep.subr.bf16.mxu1 %v2362_v1  ;;  %v501_v21 = vrot.slane %v499_v13, 7  ;;  %v683_v54 = vmax.bf16 %v2364_v18, %v1828_v30 }
  0x25   : > { %2102 = vmatpush3.bf16.msra.mxu0 %v2294_v37  ;;  %v502_v32 = vor.u32 %v501_v21, %v498_v16  ;;  %v507_v37 = vrot.slane %v505_v17, 7  ;;  %v1884_v17 = vld [vmem:[%s2436_s6 + $0x2c] sm:$0x7]  ;;  %v959_v21 = vmax.bf16 %v2364_v18, %v1883_v15 }
  0x26   : > { %2122 = vmatpush3.bf16.msra.mxu1 %v2295_v41  ;;  %2103 = vmatprep.subr.bf16.mxu0 %v2362_v1  ;;  %v547_v41 = vshll.u32 %v487_v11, 16  ;;  %v722_v11 = vrot.slane %v708_v4, %v2473_v38  ;;  %v960_v23 = vmax.bf16 %v2364_v18, %v1884_v17  ;;  %v1856_v4 = vld [vmem:[%s2436_s6 + $0x40] sm:$0x3] }
  0x27   : > { %2123 = vmatprep.subr.bf16.mxu1 %v2362_v1  ;;  %v822_v19 = vmax.bf16 %v2364_v18, %v1856_v4 }
  0x28   : > { %v981_v28 = vrot.slane %v960_v23, %v2473_v38 }
  0x29   : > { %2104 = vmatpush3.bf16.msra.mxu0 %v2296_v44  ;;  %v503_v44 = vrot.slane %v502_v32, 2  ;;  %v2317_v32 = vld [vmem:[%s2867_s1 + $0x170] sm:$0xff]  }
  0x2a   : > { %2124 = vmatpush3.bf16.msra.mxu1 %v2297_v47  ;;  %2129 = vmatprep.subr.bf16.mxu0 %v2362_v1  ;;  %v540_v47 = vrot.slane %v538_v35, 6  ;;  %v1014_v34 = vshrl.u32 %v981_v28, 16  ;;  %v982_v36 = vcombine.high %v981_v28, %v981_v28 }
  0x2b   : > { %2149 = vmatprep.subr.bf16.mxu1 %v2362_v1  ;;  %v508_v56 = vsel %vm2567_vm7, %v503_v44, %v507_v37  ;;  %v2318_v44 = vld [vmem:[%s2867_s1 + $0x128] sm:$0xff]  }
  0x2c   : > { %2106 = vmatmul.mubr.bf16.vlgmr.msra.gmra.mxu0 %v242_v48  ;;  %v2308_v48 = vld [vmem:[%s2867_s1 + $0x90] sm:$0xff]   ;;  %v568_v63 = vcombine.low %v508_v56, %v522_v57 }
  0x2d   : > { %2126 = vmatmul.mubr.bf16.vlgmr.msra.gmra.mxu1 %v353_v49  ;;  %2130 = vmatpush3.bf16.msra.mxu0 %v2298_v50  ;;  %v535_v49 = vrot.slane %v533_v29, 7  ;;  %v543_v50 = vrot.slane %v541_v40, 7  ;;  %v989_v29 = vrot.slane %v961_v24, %v2473_v38  ;;  %v2325_v24 = vld [vmem:[%s2867_s1 + $0x150] sm:$0xff]  }
  0x2e   : > { %2150 = vmatpush3.bf16.msra.mxu1 %v2299_v51  ;;  %2131 = vmatprep.subr.bf16.mxu0 %v2362_v1  ;;  %v682_v51 = vmax.bf16 %v2364_v18, %v1827_v25  ;;  %v576_v7 = vrot.slane %v568_v63, %v2473_v38  ;;  %v962_v25 = vmax.bf16 %v2364_v18, %v1886_v20  ;;  %v2321_v63 = vld [vmem:[%s2867_s1 + $0x160] sm:$0xff]  }
  0x2f   : > { %2151 = vmatprep.subr.bf16.mxu1 %v2362_v1  ;;  %2145 = vmatprep.mubr.msk.bf16.mxu0 %vm2363_vm0, %v2362_v1  ;;  %v544_v58 = vor.u32 %v543_v50, %v540_v47  ;;  %v990_v37 = vcombine.high %v989_v29, %v989_v29  ;;  %v1031_v47 = vshll.u32 %v989_v29, 16 }
  0x30   : > { %2165 = vmatprep.mubr.msk.bf16.mxu1 %vm2363_vm0, %v2362_v1  ;;  %v997_v33 = vrot.slane %v962_v25, %v2473_v38 }
  0x31   : > { %2132 = vmatpush3.bf16.msra.mxu0 %v2300_v52  ;;  %v531_v52 = vrot.slane %v530_v46, 2  ;;  %v1016_v46 = vrot.slane %v1014_v34, 6  ;;  %v1033_v55 = vrot.slane %v1031_v47, 7  ;;  %v2333_v47 = vld [vmem:[%s2867_s1 + $0x1f0] sm:$0xff]  }
  0x32   : > { %2152 = vmatpush3.bf16.msra.mxu1 %v2301_v53  ;;  %2133 = vmatprep.subr.bf16.mxu0 %v2362_v1  ;;  %v549_v53 = vrot.slane %v547_v41, 7  ;;  %v1017_v41 = vshll.u32 %v981_v28, 16  ;;  %v998_v45 = vcombine.high %v997_v33, %v997_v33  ;;  %v1045_v56 = vshll.u32 %v997_v33, 16 }
  0x33   : > { %2153 = vmatprep.subr.bf16.mxu1 %v2362_v1  ;;  %v536_v61 = vsel %vm2567_vm7, %v531_v52, %v535_v49  ;;  %v2320_v52 = vld [vmem:[%s2867_s1 + $0x120] sm:$0xff]  }
  0x34   : > { %v1019_v49 = vrot.slane %v1017_v41, 7 }
  0x35   : > { %2134 = vmatpush3.bf16.msra.mxu0 %v2302_v62  ;;  %v545_v62 = vrot.slane %v544_v58, 2  ;;  %v1037_v58 = vshll.u32 %v990_v37, 16 }
  0x36   : > { %2154 = vmatpush3.bf16.msra.mxu1 %v2303_v3  ;;  %2135 = vmatprep.subr.bf16.mxu0 %v2362_v1  ;;  %v707_v3 = vcombine.low %v682_v51, %v683_v54  ;;  %v1042_v51 = vshrl.u32 %v997_v33, 16  ;;  %v1023_v54 = vshll.u32 %v982_v36, 16  ;;  %v2327_v33 = vld [vmem:[%s2867_s1 + $0x148] sm:$0xff]   ;;  %v2328_v36 = vld [vmem:[%s2867_s1 + $0x100] sm:$0xff]  }
  0x37   : > { %2155 = vmatprep.subr.bf16.mxu1 %v2362_v1  ;;  %v550_v2 = vsel %vm2567_vm7, %v545_v62, %v549_v53  ;;  %v1051_v62 = vshll.u32 %v998_v45, 16  ;;  %v2331_v45 = vld [vmem:[%s2867_s1 + $0x1f8] sm:$0xff]  }
  0x38   : > { %v569_v6 = vcombine.low %v536_v61, %v550_v2  ;;  %v1044_v59 = vrot.slane %v1042_v51, 6  ;;  %v1047_v61 = vrot.slane %v1045_v56, 7  ;;  %v2322_v2 = vld [vmem:[%s2867_s1 + $0x118] sm:$0xff]   ;;  %v2337_v51 = vld [vmem:[%s2867_s1 + $0x1e0] sm:$0xff]   ;;  %v1913_v56 = vld [vmem:[%s2436_s6 + $0xc] sm:$0x3] }
  0x39   : > { %2136 = vmatpush3.bf16.msra.mxu0 %v2304_v5  ;;  %v2311_v5 = vld [vmem:[%s2867_s1 + $0xc8] sm:$0xff]  }
  0x3a   : > { %2156 = vmatpush3.bf16.msra.mxu1 %v2305_v10  ;;  %2137 = vmatprep.subr.bf16.mxu0 %v2362_v1  ;;  %v583_v8 = vrot.slane %v569_v6, %v2473_v38  ;;  %v715_v10 = vrot.slane %v707_v3, %v2473_v38  ;;  %v1855_v3 = vld [vmem:[%s2436_s6 + $0x3c] sm:$0x3]  ;;  %v1858_v6 = vld [vmem:[%s2436_s6 + $0x48] sm:$0x3] }
  0x3b   : > { %2157 = vmatprep.subr.bf16.mxu1 %v2362_v1  ;;  %v821_v17 = vmax.bf16 %v2364_v18, %v1855_v3  ;;  %v2340_v3 = vld [vmem:[%s2867_s1 + $0x190] sm:$0xff]  }
  0x3c   : > { %v584_v13 = vcombine.low %v576_v7, %v583_v8  ;;  %v723_v16 = vcombine.low %v715_v10, %v722_v11  ;;  %v1025_v8 = vrot.slane %v1023_v54, 7  ;;  %v2323_v10 = vld [vmem:[%s2867_s1 + $0x158] sm:$0xff]   ;;  %v1911_v54 = vld [vmem:[%s2436_s6 + $0x4] sm:$0x3] }
  0x3d   : > { %2138 = vmatpush3.bf16.msra.mxu0 %v2306_v26  ;;  %v973_v26 = vrot.slane %v959_v21, %v2473_v38  ;;  %v824_v21 = vmax.bf16 %v2364_v18, %v1858_v6  ;;  %v846_v28 = vcombine.low %v821_v17, %v822_v19  ;;  %v1969_v17 = vld [vmem:[%s2436_s6 + $0xc] sm:$0x7]  ;;  %v1970_v19 = vld [vmem:[%s2436_s6 + $0x10] sm:$0x7] }
  0x3e   : > { %2158 = vmatpush3.bf16.msra.mxu1 %v2307_v42  ;;  %2139 = vmatprep.subr.bf16.mxu0 %v2362_v1  ;;  %v1028_v42 = vshrl.u32 %v989_v29, 16 }
  0x3f   : > { %2159 = vmatprep.subr.bf16.mxu1 %v2362_v1  ;;  %v1000_v30 = vshrl.u32 %v973_v26, 16  ;;  %v1003_v31 = vshll.u32 %v973_v26, 16  ;;  %v974_v35 = vcombine.high %v973_v26, %v973_v26  ;;  %v854_v34 = vrot.slane %v846_v28, %v2473_v38 }
  0x40   : > { %v1030_v50 = vrot.slane %v1028_v42, 6  ;;  %v2330_v42 = vld [vmem:[%s2867_s1 + $0x1b8] sm:$0xff]   ;;  %v1466_v28 = vmax.bf16 %v2364_v18, %v1970_v19 }
  0x41   : > { %2140 = vmatpush3.bf16.msra.mxu0 %v2308_v48  ;;  %v1002_v39 = vrot.slane %v1000_v30, 6  ;;  %v1005_v40 = vrot.slane %v1003_v31, 7  ;;  %v2319_v48 = vld [vmem:[%s2867_s1 + $0x168] sm:$0xff]   ;;  %v1009_v53 = vshll.u32 %v974_v35, 16 }
  0x42   : > { %2160 = vmatpush3.bf16.msra.mxu1 %v2309_v60  ;;  %2141 = vmatprep.subr.bf16.mxu0 %v2362_v1  ;;  %v1020_v60 = vor.u32 %v1019_v49, %v1016_v46  ;;  %v2326_v30 = vld [vmem:[%s2867_s1 + $0x108] sm:$0xff]   ;;  %v2332_v46 = vld [vmem:[%s2867_s1 + $0x1b0] sm:$0xff]  }
  0x43   : > { %2161 = vmatprep.subr.bf16.mxu1 %v2362_v1  ;;  %v1006_v57 = vor.u32 %v1005_v40, %v1002_v39  ;;  %v1011_v7 = vrot.slane %v1009_v53, 7  ;;  %v2329_v40 = vld [vmem:[%s2867_s1 + $0x140] sm:$0xff]   ;;  %v2335_v49 = vld [vmem:[%s2867_s1 + $0x1e8] sm:$0xff]   ;;  %v2339_v53 = vld [vmem:[%s2867_s1 + $0x1d8] sm:$0xff]  }
  0x45   : > { %2142 = vmatpush3.bf16.msra.mxu0 %v2310_v0  ;;  %v1034_v0 = vor.u32 %v1033_v55, %v1030_v50  ;;  %v1007_v11 = vrot.slane %v1006_v57, 2  ;;  %v2336_v50 = vld [vmem:[%s2867_s1 + $0x1a0] sm:$0xff]   ;;  %v1912_v55 = vld [vmem:[%s2436_s6 + $0x8] sm:$0x3]  ;;  %v1914_v57 = vld [vmem:[%s2436_s6 + $0x10] sm:$0x3] }
  0x46   : > { %2162 = vmatpush3.bf16.msra.mxu1 %v2311_v5  ;;  %2143 = vmatprep.subr.bf16.mxu0 %v2362_v1  ;;  %v1857_v5 = vld [vmem:[%s2436_s6 + $0x44] sm:$0x3] }
  0x47   : > { %2163 = vmatprep.subr.bf16.mxu1 %v2362_v1  ;;  %v1035_v15 = vrot.slane %v1034_v0, 2  ;;  %v823_v20 = vmax.bf16 %v2364_v18, %v1857_v5  ;;  %v1012_v23 = vsel %vm2567_vm7, %v1007_v11, %v1011_v7  ;;  %v1188_v0 = vmax.bf16 %v2364_v18, %v1913_v56  ;;  %v2342_v11 = vld [vmem:[%s2867_s1 + $0x188] sm:$0xff]  }
  0x49   : > { %2144 = vmatpush3.bf16.msra.mxu0 %v2312_v9  ;;  %v1048_v9 = vor.u32 %v1047_v61, %v1044_v59  ;;  %v847_v29 = vcombine.low %v823_v20, %v824_v21  ;;  %v1940_v59 = vld [vmem:[%s2436_s6 + $0x1c] sm:$0x3]  ;;  %v1942_v61 = vld [vmem:[%s2436_s6 + $0x24] sm:$0x3] }
  0x4a   : > { %2164 = vmatpush3.bf16.msra.mxu1 %v2313_v12  ;;  %2169 = vmatprep.subr.bf16.mxu0 %v2362_v1  ;;  %v1039_v12 = vrot.slane %v1037_v58, 7  ;;  %v1939_v58 = vld [vmem:[%s2436_s6 + $0x18] sm:$0x3]  ;;  %v1326_v5 = vmax.bf16 %v2364_v18, %v1940_v59  ;;  %v1328_v7 = vmax.bf16 %v2364_v18, %v1942_v61 }
  0x4b   : > { %2189 = vmatprep.subr.bf16.mxu1 %v2362_v1  ;;  %v861_v35 = vrot.slane %v847_v29, %v2473_v38  ;;  %v1325_v4 = vmax.bf16 %v2364_v18, %v1939_v58  ;;  %v2345_v29 = vld [vmem:[%s2867_s1 + $0x1c0] sm:$0xff]  }
  0x4c   : > { %2146 = vmatmul.mubr.bf16.vlgmr.msra.gmra.mxu0 %v584_v13  ;;  %v1021_v13 = vrot.slane %v1020_v60, 2  ;;  %v1040_v26 = vsel %vm2567_vm7, %v1035_v15, %v1039_v12  ;;  %v1941_v60 = vld [vmem:[%s2436_s6 + $0x20] sm:$0x3]  ;;  %v1968_v15 = vld [vmem:[%s2436_s6 + $0x8] sm:$0x7] }
  0x4d   : > { %2170 = vmatpush3.bf16.msra.mxu0 %v2314_v14  ;;  %2166 = vmatmul.mubr.bf16.vlgmr.msra.gmra.mxu1 %v723_v16  ;;  %v1053_v14 = vrot.slane %v1051_v62, 7  ;;  %v1049_v16 = vrot.slane %v1048_v9, 2  ;;  %v862_v41 = vcombine.low %v854_v34, %v861_v35  ;;  %v1186_v62 = vmax.bf16 %v2364_v18, %v1911_v54 }
  0x4e   : > { %2190 = vmatpush3.bf16.msra.mxu1 %v2315_v22  ;;  %2171 = vmatprep.subr.bf16.mxu0 %v2362_v1  ;;  %v2324_v22 = vld [vmem:[%s2867_s1 + $0x110] sm:$0xff]   ;;  %v1026_v25 = vsel %vm2567_vm7, %v1021_v13, %v1025_v8  ;;  %v1327_v6 = vmax.bf16 %v2364_v18, %v1941_v60  ;;  %v1350_v12 = vcombine.low %v1325_v4, %v1326_v5 }
  0x4f   : > { %2191 = vmatprep.subr.bf16.mxu1 %v2362_v1  ;;  %2185 = vmatprep.mubr.msk.bf16.mxu0 %vm2363_vm0, %v2362_v1  ;;  %v1072_v31 = vcombine.low %v1012_v23, %v1026_v25  ;;  %v2341_v8 = vld [vmem:[%s2867_s1 + $0x1d0] sm:$0xff]   ;;  %v1464_v23 = vmax.bf16 %v2364_v18, %v1968_v15  ;;  %v1501_v35 = vrot.slane %v1466_v28, %v2473_v38 }
  0x50   : > { %2205 = vmatprep.mubr.msk.bf16.mxu1 %vm2363_vm0, %v2362_v1  ;;  %v1351_v13 = vcombine.low %v1327_v6, %v1328_v7  ;;  %v1358_v25 = vrot.slane %v1350_v12, %v2473_v38  ;;  %v2351_v15 = vld [vmem:[%s2867_s1 + $0x210] sm:$0xff]  }
  0x51   : > { %2172 = vmatpush3.bf16.msra.mxu0 %v2316_v27  ;;  %v1054_v27 = vsel %vm2567_vm7, %v1049_v16, %v1053_v14  ;;  %v1080_v37 = vrot.slane %v1072_v31, %v2473_v38  ;;  %v1967_v14 = vld [vmem:[%s2436_s6 + $0x4] sm:$0x7]  ;;  %v2343_v16 = vld [vmem:[%s2867_s1 + $0x1c8] sm:$0xff]  }
  0x52   : > { %2192 = vmatpush3.bf16.msra.mxu1 %v2317_v32  ;;  %2173 = vmatprep.subr.bf16.mxu0 %v2362_v1  ;;  %v1073_v32 = vcombine.low %v1040_v26, %v1054_v27  ;;  %v1365_v26 = vrot.slane %v1351_v13, %v2473_v38  ;;  %v1465_v27 = vmax.bf16 %v2364_v18, %v1969_v17 }
  0x53   : > { %2193 = vmatprep.subr.bf16.mxu1 %v2362_v1 }
  0x54   : > { %v1087_v39 = vrot.slane %v1073_v32, %v2473_v38  ;;  %v1485_v32 = vrot.slane %v1464_v23, %v2473_v38  ;;  %v1493_v34 = vrot.slane %v1465_v27, %v2473_v38  ;;  %v2352_v23 = vld [vmem:[%s2867_s1 + $0x208] sm:$0xff]  }
  0x55   : > { %2174 = vmatpush3.bf16.msra.mxu0 %v2318_v44 }
  0x56   : > { %2194 = vmatpush3.bf16.msra.mxu1 %v2319_v48  ;;  %2175 = vmatprep.subr.bf16.mxu0 %v2362_v1  ;;  %v1088_v44 = vcombine.low %v1080_v37, %v1087_v39  ;;  %v2334_v48 = vld [vmem:[%s2867_s1 + $0x1a8] sm:$0xff]   ;;  %v1518_v39 = vshrl.u32 %v1485_v32, 16 }
  0x57   : > { %2195 = vmatprep.subr.bf16.mxu1 %v2362_v1 }
  0x59   : > { %2176 = vmatpush3.bf16.msra.mxu0 %v2320_v52  ;;  %v2338_v52 = vld [vmem:[%s2867_s1 + $0x198] sm:$0xff]  }
  0x5a   : > { %2196 = vmatpush3.bf16.msra.mxu1 %v2321_v63  ;;  %2177 = vmatprep.subr.bf16.mxu0 %v2362_v1  ;;  %v1187_v63 = vmax.bf16 %v2364_v18, %v1912_v55  ;;  %v2348_v55 = vld [vmem:[%s2867_s1 + $0x228] sm:$0xff]  }
  0x5b   : > { %2197 = vmatprep.subr.bf16.mxu1 %v2362_v1 }
  0x5c   : > { %v1211_v9 = vcombine.low %v1186_v62, %v1187_v63 }
  0x5d   : > { %2178 = vmatpush3.bf16.msra.mxu0 %v2322_v2  ;;  %v1189_v2 = vmax.bf16 %v2364_v18, %v1914_v57 }
  0x5e   : > { %2198 = vmatpush3.bf16.msra.mxu1 %v2323_v10  ;;  %2179 = vmatprep.subr.bf16.mxu0 %v2362_v1  ;;  %v1219_v20 = vrot.slane %v1211_v9, %v2473_v38 }
  0x5f   : > { %2199 = vmatprep.subr.bf16.mxu1 %v2362_v1  ;;  %v1212_v10 = vcombine.low %v1188_v0, %v1189_v2  ;;  %v2349_v0 = vld [vmem:[%s2867_s1 + $0x220] sm:$0xff]  }
  0x61   : > { %2180 = vmatpush3.bf16.msra.mxu0 %v2324_v22  ;;  %v1226_v21 = vrot.slane %v1212_v10, %v2473_v38  ;;  %v1463_v22 = vmax.bf16 %v2364_v18, %v1967_v14  ;;  %v1366_v18 = vcombine.low %v1358_v25, %v1365_v26  ;;  %v2350_v10 = vld [vmem:[%s2867_s1 + $0x218] sm:$0xff]  }
  0x62   : > { %2200 = vmatpush3.bf16.msra.mxu1 %v2325_v24  ;;  %2181 = vmatprep.subr.bf16.mxu0 %v2362_v1  ;;  %v2344_v24 = vld [vmem:[%s2867_s1 + $0x180] sm:$0xff]  }
  0x63   : > { %2201 = vmatprep.subr.bf16.mxu1 %v2362_v1  ;;  %v1477_v31 = vrot.slane %v1463_v22, %v2473_v38 }
  0x65   : > { %2182 = vmatpush3.bf16.msra.mxu0 %v2326_v30  ;;  %v1227_v30 = vcombine.low %v1219_v20, %v1226_v21  ;;  %v1507_v37 = vshll.u32 %v1477_v31, 16 }
  0x66   : > { %2202 = vmatpush3.bf16.msra.mxu1 %v2327_v33  ;;  %2183 = vmatprep.subr.bf16.mxu0 %v2362_v1  ;;  %v2346_v33 = vld [vmem:[%s2867_s1 + $0x238] sm:$0xff]  }
  0x67   : > { %2203 = vmatprep.subr.bf16.mxu1 %v2362_v1 }
  0x69   : > { %2184 = vmatpush3.bf16.msra.mxu0 %v2328_v36  ;;  %v1504_v36 = vshrl.u32 %v1477_v31, 16 }
  0x6a   : > { %2204 = vmatpush3.bf16.msra.mxu1 %v2329_v40  ;;  %2209 = vmatprep.subr.bf16.mxu0 %v2362_v1  ;;  %v1521_v40 = vshll.u32 %v1485_v32, 16 }
  0x6b   : > { %2229 = vmatprep.subr.bf16.mxu1 %v2362_v1 }
  0x6c   : > { %2186 = vmatmul.mubr.bf16.vlgmr.msra.gmra.mxu0 %v862_v41  ;;  %v2347_v41 = vld [vmem:[%s2867_s1 + $0x230] sm:$0xff]   ;;  %v1523_v54 = vrot.slane %v1521_v40, 7 }
  0x6d   : > { %2210 = vmatpush3.bf16.msra.mxu0 %v2330_v42  ;;  %2206 = vmatmul.mubr.bf16.vlgmr.msra.gmra.mxu1 %v1088_v44  ;;  %v1532_v42 = vshrl.u32 %v1493_v34, 16  ;;  %v1535_v44 = vshll.u32 %v1493_v34, 16 }
  0x6e   : > { %2230 = vmatpush3.bf16.msra.mxu1 %v2331_v45  ;;  %2211 = vmatprep.subr.bf16.mxu0 %v2362_v1  ;;  %v1546_v45 = vshrl.u32 %v1501_v35, 16 }
  0x6f   : > { %2231 = vmatprep.subr.bf16.mxu1 %v2362_v1  ;;  %2225 = vmatprep.mubr.msk.bf16.mxu0 %vm2363_vm0, %v2362_v1  ;;  %v1534_v56 = vrot.slane %v1532_v42, 6  ;;  %v1537_v57 = vrot.slane %v1535_v44, 7 }
  0x70   : > { %2245 = vmatprep.mubr.msk.bf16.mxu1 %vm2363_vm0, %v2362_v1  ;;  %v1548_v58 = vrot.slane %v1546_v45, 6 }
  0x71   : > { %2212 = vmatpush3.bf16.msra.mxu0 %v2332_v46  ;;  %v1549_v46 = vshll.u32 %v1501_v35, 16 }
  0x72   : > { %2232 = vmatpush3.bf16.msra.mxu1 %v2333_v47  ;;  %2213 = vmatprep.subr.bf16.mxu0 %v2362_v1  ;;  %v1478_v47 = vcombine.high %v1477_v31, %v1477_v31 }
  0x73   : > { %2233 = vmatprep.subr.bf16.mxu1 %v2362_v1  ;;  %v1551_v59 = vrot.slane %v1549_v46, 7 }
  0x74   : > { %v1513_v61 = vshll.u32 %v1478_v47, 16 }
  0x75   : > { %2214 = vmatpush3.bf16.msra.mxu0 %v2334_v48  ;;  %v1486_v48 = vcombine.high %v1485_v32, %v1485_v32  ;;  %v1552_v4 = vor.u32 %v1551_v59, %v1548_v58 }
  0x76   : > { %2234 = vmatpush3.bf16.msra.mxu1 %v2335_v49  ;;  %2215 = vmatprep.subr.bf16.mxu0 %v2362_v1  ;;  %v1494_v49 = vcombine.high %v1493_v34, %v1493_v34  ;;  %v1515_v7 = vrot.slane %v1513_v61, 7 }
  0x77   : > { %2235 = vmatprep.subr.bf16.mxu1 %v2362_v1  ;;  %v1527_v62 = vshll.u32 %v1486_v48, 16  ;;  %v1553_v13 = vrot.slane %v1552_v4, 2 }
  0x78   : > { %v1541_v63 = vshll.u32 %v1494_v49, 16 }
  0x79   : > { %2216 = vmatpush3.bf16.msra.mxu0 %v2336_v50  ;;  %v1502_v50 = vcombine.high %v1501_v35, %v1501_v35 }
  0x7a   : > { %2236 = vmatpush3.bf16.msra.mxu1 %v2337_v51  ;;  %2217 = vmatprep.subr.bf16.mxu0 %v2362_v1  ;;  %v1506_v51 = vrot.slane %v1504_v36, 6  ;;  %v1543_v9 = vrot.slane %v1541_v63, 7 }
  0x7b   : > { %2237 = vmatprep.subr.bf16.mxu1 %v2362_v1  ;;  %v1555_v5 = vshll.u32 %v1502_v50, 16 }
  0x7d   : > { %2218 = vmatpush3.bf16.msra.mxu0 %v2338_v52  ;;  %v1509_v52 = vrot.slane %v1507_v37, 7  ;;  %v1557_v14 = vrot.slane %v1555_v5, 7 }
  0x7e   : > { %2238 = vmatpush3.bf16.msra.mxu1 %v2339_v53  ;;  %2219 = vmatprep.subr.bf16.mxu0 %v2362_v1  ;;  %v1520_v53 = vrot.slane %v1518_v39, 6 }
  0x7f   : > { %2239 = vmatprep.subr.bf16.mxu1 %v2362_v1  ;;  %v1510_v60 = vor.u32 %v1509_v52, %v1506_v51  ;;  %v1558_v20 = vsel %vm2567_vm7, %v1553_v13, %v1557_v14 }
  0x80   : > { %v1524_v2 = vor.u32 %v1523_v54, %v1520_v53 }
  0x81   : > { %2220 = vmatpush3.bf16.msra.mxu0 %v2340_v3  ;;  %v1538_v3 = vor.u32 %v1537_v57, %v1534_v56  ;;  %v1511_v6 = vrot.slane %v1510_v60, 2 }
  0x82   : > { %2240 = vmatpush3.bf16.msra.mxu1 %v2341_v8  ;;  %2221 = vmatprep.subr.bf16.mxu0 %v2362_v1  ;;  %v1529_v8 = vrot.slane %v1527_v62, 7 }
  0x83   : > { %2241 = vmatprep.subr.bf16.mxu1 %v2362_v1  ;;  %v1539_v12 = vrot.slane %v1538_v3, 2 }
  0x85   : > { %2222 = vmatpush3.bf16.msra.mxu0 %v2342_v11  ;;  %v1525_v11 = vrot.slane %v1524_v2, 2  ;;  %v1544_v19 = vsel %vm2567_vm7, %v1539_v12, %v1543_v9  ;;  %v1995_v12 = vld [vmem:[%s2868_s2] ss:$0 sm:$0xff] }
  0x86   : > { %2242 = vmatpush3.bf16.msra.mxu1 %v2343_v16  ;;  %2223 = vmatprep.subr.bf16.mxu0 %v2362_v1  ;;  %v1516_v16 = vsel %vm2567_vm7, %v1511_v6, %v1515_v7  ;;  %v1577_v22 = vcombine.low %v1544_v19, %v1558_v20 }
  0x87   : > { %2243 = vmatprep.subr.bf16.mxu1 %v2362_v1  ;;  %v1530_v17 = vsel %vm2567_vm7, %v1525_v11, %v1529_v8 }
  0x88   : > { %v1576_v21 = vcombine.low %v1516_v16, %v1530_v17  ;;  %v1591_v25 = vrot.slane %v1577_v22, %v2473_v38 }
  0x89   : > { %2224 = vmatpush3.bf16.msra.mxu0 %v2344_v24 }
  0x8a   : > { %2244 = vmatpush3.bf16.msra.mxu1 %v2345_v29  ;;  %2249 = vmatprep.subr.bf16.mxu0 %v2362_v1  ;;  %v1584_v24 = vrot.slane %v1576_v21, %v2473_v38 }
  0x8c   : > { %2226 = vmatmul.mubr.bf16.vlgmr.msra.gmra.mxu0 %v1227_v30  ;;  %v1592_v26 = vcombine.low %v1584_v24, %v1591_v25 }
  0x8d   : > { %2250 = vmatpush3.bf16.msra.mxu0 %v2346_v33  ;;  %2246 = vmatmul.mubr.bf16.vlgmr.msra.gmra.mxu1 %v1366_v18 }
  0x8e   : > { %2251 = vmatprep.subr.bf16.mxu0 %v2362_v1  ;;  %2265 = vmatprep.mubr.msk.bf16.mxu0 %vm2363_vm0, %v2362_v1 }
  0x91   : > { %2252 = vmatpush3.bf16.msra.mxu0 %v2347_v41 }
  0x92   : > { %2253 = vmatprep.subr.bf16.mxu0 %v2362_v1 }
  0x95   : > { %2254 = vmatpush3.bf16.msra.mxu0 %v2348_v55 }
  0x96   : > { %2255 = vmatprep.subr.bf16.mxu0 %v2362_v1 }
  0x99   : > { %2256 = vmatpush3.bf16.msra.mxu0 %v2349_v0 }
  0x9a   : > { %2257 = vmatprep.subr.bf16.mxu0 %v2362_v1 }
  0x9d   : > { %2258 = vmatpush3.bf16.msra.mxu0 %v2350_v10 }
  0x9e   : > { %2259 = vmatprep.subr.bf16.mxu0 %v2362_v1 }
  0xa1   : > { %2260 = vmatpush3.bf16.msra.mxu0 %v2351_v15 }
  0xa2   : > { %2261 = vmatprep.subr.bf16.mxu0 %v2362_v1 }
  0xa5   : > { %2262 = vmatpush3.bf16.msra.mxu0 %v2352_v23 }
  0xa6   : > { %2263 = vmatprep.subr.bf16.mxu0 %v2362_v1 }
  0xa9   : > { %2264 = vmatpush3.bf16.msra.mxu0 %v2353_v43 }
  0xac   : > { %2266 = vmatmul.mubr.bf16.vlgmr.msra.gmra.mxu0 %v1592_v26 }
  0xec   : > { %v326_v27 = vpop.f32.mrf.mxu0 }
  0xed   : > { %v437_v28 = vpop.f32.mrf.mxu1 }
  0xee   : > { %v438_v29 = vadd.f32 %v437_v28, %v326_v27  ;;  %v2107_v30 = vpop.f32.mrf.mxu0 }
  0xef   : > { %v2127_v31 = vpop.f32.mrf.mxu1 }
  0xf0   : > { %v329_v32 = vpop.f32.mrf.mxu0 }
  0xf1   : > { %v440_v33 = vpop.f32.mrf.mxu1 }
  0xf2   : > { %v441_v18 = vadd.f32 %v440_v33, %v329_v32  ;;  %v2108_v34 = vpop.f32.mrf.mxu0 }
  0xf3   : > { %v2128_v38 = vpop.f32.mrf.mxu1 }
 0x10c   : > { %v668_v35 = vpop.f32.mrf.mxu0 }
 0x10d   : > { %v675_v36 = vadd.f32 %v668_v35, %v438_v29  ;;  %v807_v37 = vpop.f32.mrf.mxu1 }
 0x10e   : > { %v2147_v39 = vpop.f32.mrf.mxu0 }
 0x10f   : > { %v814_v40 = vadd.f32 %v807_v37, %v675_v36  ;;  %v2167_v41 = vpop.f32.mrf.mxu1 }
 0x110   : > { %v671_v1 = vpop.f32.mrf.mxu0 }
 0x111   : > { %v676_v42 = vadd.f32 %v671_v1, %v441_v18  ;;  %v810_v44 = vpop.f32.mrf.mxu1 }
 0x112   : > { %v2148_v45 = vpop.f32.mrf.mxu0 }
 0x113   : > { %v815_v46 = vadd.f32 %v810_v44, %v676_v42  ;;  %v2168_v47 = vpop.f32.mrf.mxu1 }
 0x12c   : > { %v946_v48 = vpop.f32.mrf.mxu0 }
 0x12d   : > { %v1172_v49 = vpop.f32.mrf.mxu1  ;;  %v953_v0 = vadd.f32 %v946_v48, %v814_v40 }
 0x12e   : > { %v2187_v50 = vpop.f32.mrf.mxu0 }
 0x12f   : > { %v2207_v51 = vpop.f32.mrf.mxu1  ;;  %v1179_v3 = vadd.f32 %v1172_v49, %v953_v0 }
 0x130   : > { %v949_v52 = vpop.f32.mrf.mxu0 }
 0x131   : > { %v1175_v53 = vpop.f32.mrf.mxu1  ;;  %v954_v2 = vadd.f32 %v949_v52, %v815_v46 }
 0x132   : > { %v2188_v54 = vpop.f32.mrf.mxu0 }
 0x133   : > { %v2208_v55 = vpop.f32.mrf.mxu1  ;;  %v1180_v4 = vadd.f32 %v1175_v53, %v954_v2 }
 0x14c   : > { %v1311_v56 = vpop.f32.mrf.mxu0 }
 0x14d   : > { %v1450_v57 = vpop.f32.mrf.mxu1  ;;  %v1318_v5 = vadd.f32 %v1311_v56, %v1179_v3 }
 0x14e   : > { %v2227_v58 = vpop.f32.mrf.mxu0 }
 0x14f   : > { %v2247_v59 = vpop.f32.mrf.mxu1  ;;  %v1457_v8 = vadd.f32 %v1450_v57, %v1318_v5 }
 0x150   : > { %v1314_v60 = vpop.f32.mrf.mxu0 }
 0x151   : > { %v1453_v61 = vpop.f32.mrf.mxu1  ;;  %v1319_v6 = vadd.f32 %v1314_v60, %v1180_v4 }
 0x152   : > { %v2228_v62 = vpop.f32.mrf.mxu0 }
 0x153   : > { %v2248_v63 = vpop.f32.mrf.mxu1  ;;  %v1458_v10 = vadd.f32 %v1453_v61, %v1319_v6 }
 0x16c   : > { %v1676_v7 = vpop.f32.mrf.mxu0 }
 0x16d   : > { %v1683_v11 = vadd.f32 %v1676_v7, %v1457_v8 }
 0x16e   : > { %v2267_v9 = vpop.f32.mrf.mxu0 }
 0x16f   : > { %v1692_v16 = vadd.f32 %v1995_v12, %v1683_v11 }
 0x170   : > { %v1679_v13 = vpop.f32.mrf.mxu0 }
 0x171   : > { %v1684_v14 = vadd.f32 %v1679_v13, %v1458_v10 }
 0x172   : > { %v2268_v15 = vpop.f32.mrf.mxu0 }
 0x173   : > { %v1693_v17 = vadd.f32 %v1995_v12, %v1684_v14 }
 0x175   : > { %v2006_v19 = vpack.c.bf16 %v1693_v17, %v1692_v16 }
 0x177   : > { %2007 = vst [vmem:[%s170_s21] sm:$0xff] %v2006_v19  }
 0x178 PF: > { %s13_s12 = sadd.s32 1, %s2360_s12  }
 0x179   : > { %p10_p4 = scmp.ge.s32.totalorder %s13_s12, 4  }
 0x17b   :  { %12 = sbr.rel (!%p10_p4) target bundleno = 1 (0x1), region = 75 }

// kernel: fpn_extra_layers_forward.2
= control target key start
LH: loop header
LB: loop body
LE: loop exit
PB: predicated region body
PF: predicated region fallthrough
CT: control target
= control target key end

     0   :  { %s3045_s12 = smov 0   ;;  %s3578_s0 = inlined_call_operand.vmem [shape: bf16[2,36,9,128], index: 0, kind: input, shape index: {}]   ;;  %s3579_s1 = inlined_call_operand.vmem [shape: bf16[9,128,128], index: 1, kind: input, shape index: {}]   ;;  %s3580_s2 = inlined_call_operand.vmem [shape: f32[1,128], index: 2, kind: input, shape index: {}]   ;;  %s3581_s3 = inlined_call_operand.vmem [shape: bf16[2,64,128], index: 3, kind: output, shape index: {}]  }
   0x1 LB: > { %s2235_s13 = sadd.s32 4294967295, %s3022_s12   ;;  %p2239_p0 = scmp.ge.s32.totalorder %s3022_s12, 1  ;;  %s3022_s12 = sphi %s3045_s12, %s13_s12  }
   0x2   : > { %p137_p1 = scmp.lt.s32.totalorder %s3022_s12, 3 }
   0x4   : > { %p138_p2 = pnand %p2239_p0, %p137_p1 }
   0x6   : > { %141 = sbr.rel (%p138_p2) target bundleno = 379 (0x17b), region = 32 }
   0xb   : > { %v2944_v0 = vld [vmem:[%s3579_s1 + $0x78] sm:$0xff]   ;;  %p161_p3 = scmp.lt.s32.totalorder %s2235_s13, 1  ;;  %v2946_v2 = vld [vmem:[%s3579_s1 + $0x70] sm:$0xff]   ;;  %v2948_v4 = vld [vmem:[%s3579_s1 + $0x68] sm:$0xff]   ;;  %v3024_v15 = vmov 0  }
   0xc   : > { %v2945_v1 = vld [vmem:[%s3579_s1 + $0x38] sm:$0xff]   ;;  %2702 = vmatprep.subr.bf16.mxu0 %v2944_v0  ;;  %v2947_v3 = vld [vmem:[%s3579_s1 + $0x30] sm:$0xff]   ;;  %v2949_v5 = vld [vmem:[%s3579_s1 + $0x28] sm:$0xff]   ;;  %vm544_vm0 = vsmask.f32 3328 }
   0xd   : > { %2726 = vmatprep.subr.bf16.mxu1 %v2945_v1  ;;  %2703 = vmatpush3.bf16.msra.mxu0 %v2944_v0  ;;  %s3593_s13 = smov (!%p161_p3, %s2235_s13), 1  ;;  %v2950_v6 = vld [vmem:[%s3579_s1 + $0x60] sm:$0xff]   ;;  %v2952_v8 = vld [vmem:[%s3579_s1 + $0x58] sm:$0xff]   ;;  %v2954_v10 = vld [vmem:[%s3579_s1 + $0x50] sm:$0xff]   ;;  %vm545_vm1 = vsmask.f32 7440 }
   0xe   : > { %2727 = vmatpush3.bf16.msra.mxu1 %v2945_v1  ;;  %2704 = vmatprep.subr.bf16.mxu0 %v2946_v2  ;;  %v2951_v7 = vld [vmem:[%s3579_s1 + $0x20] sm:$0xff]   ;;  %s2934_s30 = smul.u32 288, %s3593_s13  ;;  %v2953_v9 = vld [vmem:[%s3579_s1 + $0x18] sm:$0xff]   ;;  %v2955_v14 = vld [vmem:[%s3579_s1 + $0x10] sm:$0xff]   ;;  %s2562_s18 = sshll.u32 %s3593_s13, 5 }
   0xf   : > { %2728 = vmatprep.subr.bf16.mxu1 %v2947_v3  ;;  %v2956_v21 = vld [vmem:[%s3579_s1 + $0x48] sm:$0xff]   ;;  %v2958_v26 = vld [vmem:[%s3579_s1 + $0x40] sm:$0xff]   ;;  %v2960_v35 = vld [vmem:[%s3579_s1 + $0xb8] sm:$0xff]   ;;  %s170_s21 = scalar_lea.vmem %s3581_s3, %s2562_s18 }
  0x10   : > { %s3089_s10 = scalar_lea.vmem %s3578_s0, %s2934_s30  ;;  %v2957_v23 = vld [vmem:[%s3579_s1 + $0x8] sm:$0xff]   ;;  %v2959_v30 = vld [vmem:[%s3579_s1] sm:$0xff]   ;;  %v2961_v36 = vld [vmem:[%s3579_s1 + $0xf8] sm:$0xff]  }
  0x11   : > { %2705 = vmatpush3.bf16.msra.mxu0 %v2946_v2  ;;  %v2243_v11 = vld [vmem:[%s3089_s10 + $0x48] sm:$0xf]  ;;  %v2244_v12 = vld [vmem:[%s3089_s10 + $0x50] sm:$0xf]  ;;  %v172_v13 = vld [vmem:[%s3089_s10] sm:$0xf] }
  0x12   : > { %2729 = vmatpush3.bf16.msra.mxu1 %v2947_v3  ;;  %2706 = vmatprep.subr.bf16.mxu0 %v2948_v4  ;;  %v213_v16 = vmax.bf16 %v3024_v15, %v2243_v11  ;;  %v214_v17 = vmax.bf16 %v3024_v15, %v2244_v12  ;;  %v173_v18 = vld [vmem:[%s3089_s10 + $0x8] sm:$0xf]  ;;  %v180_v19 = vmax.bf16 %v3024_v15, %v172_v13  ;;  %v2245_v25 = vld [vmem:[%s3089_s10 + $0x58] sm:$0xf]  ;;  %v2246_v27 = vld [vmem:[%s3089_s10 + $0x60] sm:$0xf] }
  0x13   : > { %2730 = vmatprep.subr.bf16.mxu1 %v2949_v5  ;;  %v181_v20 = vmax.bf16 %v3024_v15, %v173_v18  ;;  %v174_v28 = vld [vmem:[%s3089_s10 + $0x10] sm:$0xf]  ;;  %v175_v29 = vld [vmem:[%s3089_s10 + $0x18] sm:$0xf]  ;;  %v215_v31 = vmax.bf16 %v3024_v15, %v2245_v25  ;;  %v216_v32 = vmax.bf16 %v3024_v15, %v2246_v27  ;;  %v2247_v37 = vld [vmem:[%s3089_s10 + $0x68] sm:$0xf] }
  0x14   : > { %v2267_v22 = vcombine.low %v213_v16, %v214_v17  ;;  %v182_v33 = vmax.bf16 %v3024_v15, %v174_v28  ;;  %v183_v34 = vmax.bf16 %v3024_v15, %v175_v29  ;;  %v2248_v38 = vld [vmem:[%s3089_s10 + $0x70] sm:$0xf]  ;;  %v217_v39 = vmax.bf16 %v3024_v15, %v2247_v37  ;;  %v176_v40 = vld [vmem:[%s3089_s10 + $0x20] sm:$0xf]  ;;  %v177_v41 = vld [vmem:[%s3089_s10 + $0x28] sm:$0xf] }
  0x15   : > { %2707 = vmatpush3.bf16.msra.mxu0 %v2948_v4  ;;  %v2279_v24 = vcombine.low %v180_v19, %v181_v20  ;;  %v2268_v42 = vcombine.low %v215_v31, %v216_v32  ;;  %v2962_v43 = vld [vmem:[%s3579_s1 + $0xb0] sm:$0xff]   ;;  %v218_v44 = vmax.bf16 %v3024_v15, %v2248_v38  ;;  %v184_v45 = vmax.bf16 %v3024_v15, %v176_v40  ;;  %v2249_v47 = vld [vmem:[%s3089_s10 + $0x78] sm:$0xf]  ;;  %v2250_v48 = vld [vmem:[%s3089_s10 + $0x80] sm:$0xf] }
  0x16   : > { %2731 = vmatpush3.bf16.msra.mxu1 %v2949_v5  ;;  %2708 = vmatprep.subr.bf16.mxu0 %v2950_v6  ;;  %v185_v46 = vmax.bf16 %v3024_v15, %v177_v41  ;;  %v2280_v49 = vcombine.low %v182_v33, %v183_v34  ;;  %v178_v50 = vld [vmem:[%s3089_s10 + $0x30] sm:$0xf]  ;;  %v179_v51 = vld [vmem:[%s3089_s10 + $0x38] sm:$0xf]  ;;  %v219_v55 = vmax.bf16 %v3024_v15, %v2249_v47  ;;  %v2964_v59 = vld [vmem:[%s3579_s1 + $0xa8] sm:$0xff]  }
  0x17   : > { %2732 = vmatprep.subr.bf16.mxu1 %v2951_v7  ;;  %2718 = vmatprep.mubr.bf16.mxu0 %v2267_v22  ;;  %v2963_v52 = vld [vmem:[%s3579_s1 + $0xf0] sm:$0xff]   ;;  %v2269_v53 = vcombine.low %v217_v39, %v218_v44  ;;  %v220_v56 = vmax.bf16 %v3024_v15, %v2250_v48  ;;  %v186_v57 = vmax.bf16 %v3024_v15, %v178_v50  ;;  %v2965_v60 = vld [vmem:[%s3579_s1 + $0xe8] sm:$0xff]   ;;  %v512_v61 = vld [vmem:[%s3089_s10] sm:$0xf] }
  0x18   : > { %2742 = vmatprep.mubr.bf16.mxu1 %v2279_v24  ;;  %v2281_v54 = vcombine.low %v184_v45, %v185_v46  ;;  %v187_v58 = vmax.bf16 %v3024_v15, %v179_v51  ;;  %v513_v62 = vld [vmem:[%s3089_s10 + $0x4] sm:$0x1]  ;;  %v514_v0 = vld [vmem:[%s3089_s10 + $0x8] sm:$0xf]  ;;  %v515_v1 = vld [vmem:[%s3089_s10 + $0xc] sm:$0x1]  ;;  %v528_v2 = vmax.bf16 %v3024_v15, %v512_v61 }
  0x19   : > { %2709 = vmatpush3.bf16.msra.mxu0 %v2950_v6  ;;  %v2270_v63 = vcombine.low %v219_v55, %v220_v56  ;;  %v529_v3 = vmax.bf16 %v3024_v15, %v513_v62  ;;  %v530_v5 = vmax.bf16 %v3024_v15, %v514_v0  ;;  %v531_v6 = vmax.bf16 %v3024_v15, %v515_v1  ;;  %v2967_v16 = vld [vmem:[%s3579_s1 + $0xe0] sm:$0xff]   ;;  %v518_v24 = vld [vmem:[%s3089_s10 + $0x18] sm:$0xf]  ;;  %vm3192_vm2 = vmor %vm544_vm0, %vm545_vm1 }
  0x1a   : > { %2733 = vmatpush3.bf16.msra.mxu1 %v2951_v7  ;;  %2710 = vmatprep.subr.bf16.mxu0 %v2952_v8  ;;  %v2282_v4 = vcombine.low %v186_v57, %v187_v58  ;;  %v2319_v7 = vld [vmem:[%s3089_s10 + $0x90] sm:$0xf]  ;;  %v551_v11 = vshll.u32 %v528_v2, 16  ;;  %v2968_v31 = vld [vmem:[%s3579_s1 + $0x98] sm:$0xff]   ;;  %v520_v0 = vld [vmem:[%s3089_s10 + $0x20] sm:$0xf] }
  0x1b   : > { %2734 = vmatprep.subr.bf16.mxu1 %v2953_v9  ;;  %v557_v12 = vshll.u32 %v529_v3, 16  ;;  %v822_v13 = vmax.bf16 %v3024_v15, %v2319_v7  ;;  %v562_v17 = vshrl.u32 %v530_v5, 16  ;;  %v565_v18 = vshll.u32 %v530_v5, 16  ;;  %v2969_v32 = vld [vmem:[%s3579_s1 + $0xd8] sm:$0xff]   ;;  %v2970_v44 = vld [vmem:[%s3579_s1 + $0x90] sm:$0xff]   ;;  %v2972_v3 = vld [vmem:[%s3579_s1 + $0x88] sm:$0xff]  }
  0x1c   : > { %v571_v19 = vshll.u32 %v531_v6, 16  ;;  %v521_v1 = vld [vmem:[%s3089_s10 + $0x24] sm:$0x1]  ;;  %v523_v6 = vld [vmem:[%s3089_s10 + $0x2c] sm:$0x1]  ;;  %v536_v7 = vmax.bf16 %v3024_v15, %v520_v0 }
  0x1d   : > { %2711 = vmatpush3.bf16.msra.mxu0 %v2952_v8  ;;  %v2320_v8 = vld [vmem:[%s3089_s10 + $0x98] sm:$0xf]  ;;  %v564_v27 = vrot.slane %v562_v17, 4  ;;  %v567_v28 = vrot.slane %v565_v18, 5  ;;  %v2973_v17 = vld [vmem:[%s3579_s1 + $0xc8] sm:$0xff]  }
  0x1e   : > { %2735 = vmatpush3.bf16.msra.mxu1 %v2953_v9  ;;  %2712 = vmatprep.subr.bf16.mxu0 %v2954_v10  ;;  %v2966_v9 = vld [vmem:[%s3579_s1 + $0xa0] sm:$0xff]   ;;  %v823_v20 = vmax.bf16 %v3024_v15, %v2320_v8  ;;  %v573_v39 = vrot.slane %v571_v19, 5  ;;  %v537_v8 = vmax.bf16 %v3024_v15, %v521_v1 }
  0x1f   : > { %2736 = vmatprep.subr.bf16.mxu1 %v2955_v14  ;;  %v568_v38 = vor.u32 %v567_v28, %v564_v27 }
  0x20   : > { %v2343_v29 = vcombine.low %v822_v13, %v823_v20  ;;  %v526_v13 = vld [vmem:[%s3089_s10 + $0x38] sm:$0xf]  ;;  %v604_v20 = vshrl.u32 %v536_v7, 16 }
  0x21   : > { %2713 = vmatpush3.bf16.msra.mxu0 %v2954_v10  ;;  %v548_v10 = vshrl.u32 %v528_v2, 16  ;;  %v569_v50 = vrot.slane %v568_v38, 4  ;;  %v522_v2 = vld [vmem:[%s3089_s10 + $0x28] sm:$0xf] }
  0x22   : > { %2737 = vmatpush3.bf16.msra.mxu1 %v2955_v14  ;;  %2714 = vmatprep.subr.bf16.mxu0 %v2956_v21  ;;  %v516_v14 = vld [vmem:[%s3089_s10 + $0x10] sm:$0xf]  ;;  %v606_v27 = vrot.slane %v604_v20, 4 }
  0x23   : > { %2738 = vmatprep.subr.bf16.mxu1 %v2957_v23  ;;  %v550_v22 = vrot.slane %v548_v10, 4  ;;  %v532_v25 = vmax.bf16 %v3024_v15, %v516_v14  ;;  %v574_v57 = vsel %vm3192_vm2, %v569_v50, %v573_v39  ;;  %v538_v10 = vmax.bf16 %v3024_v15, %v522_v2  ;;  %v527_v14 = vld [vmem:[%s3089_s10 + $0x3c] sm:$0x1]  ;;  %v2391_v20 = vld [vmem:[%s3089_s10 + $0x90] sm:$0xf] }
  0x24   : > { %v542_v39 = vmax.bf16 %v3024_v15, %v526_v13 }
  0x25   : > { %2715 = vmatpush3.bf16.msra.mxu0 %v2956_v21  ;;  %v517_v21 = vld [vmem:[%s3089_s10 + $0x14] sm:$0x1]  ;;  %v579_v41 = vshll.u32 %v532_v25, 16 }
  0x26   : > { %2739 = vmatpush3.bf16.msra.mxu1 %v2957_v23  ;;  %2716 = vmatprep.subr.bf16.mxu0 %v2958_v26  ;;  %v553_v23 = vrot.slane %v551_v11, 5  ;;  %v533_v34 = vmax.bf16 %v3024_v15, %v517_v21  ;;  %v539_v11 = vmax.bf16 %v3024_v15, %v523_v6  ;;  %v607_v21 = vshll.u32 %v536_v7, 16  ;;  %v2978_v7 = vld [vmem:[%s3579_s1 + $0x130] sm:$0xff]  }
  0x27   : > { %2740 = vmatprep.subr.bf16.mxu1 %v2959_v30  ;;  %v581_v51 = vrot.slane %v579_v41, 5  ;;  %v2323_v41 = vld [vmem:[%s3089_s10 + $0xb0] sm:$0xf]  ;;  %v649_v50 = vshll.u32 %v542_v39, 16 }
  0x28   : > { %v554_v33 = vor.u32 %v553_v23, %v550_v22  ;;  %v585_v47 = vshll.u32 %v533_v34, 16  ;;  %v613_v22 = vshll.u32 %v537_v8, 16  ;;  %v618_v23 = vshrl.u32 %v538_v10, 16 }
  0x29   : > { %2717 = vmatpush3.bf16.msra.mxu0 %v2958_v26  ;;  %v559_v26 = vrot.slane %v557_v12, 5  ;;  %v525_v12 = vld [vmem:[%s3089_s10 + $0x34] sm:$0x1]  ;;  %v609_v28 = vrot.slane %v607_v21, 5  ;;  %v826_v2 = vmax.bf16 %v3024_v15, %v2323_v41 }
  0x2a   : > { %2741 = vmatpush3.bf16.msra.mxu1 %v2959_v30  ;;  %2750 = vmatprep.subr.bf16.mxu0 %v2960_v35  ;;  %v519_v30 = vld [vmem:[%s3089_s10 + $0x1c] sm:$0x1]  ;;  %v555_v45 = vrot.slane %v554_v33, 4  ;;  %v587_v55 = vrot.slane %v585_v47, 5  ;;  %v620_v33 = vrot.slane %v618_v23, 4 }
  0x2b   : > { %2774 = vmatprep.subr.bf16.mxu1 %v2961_v36  ;;  %v535_v40 = vmax.bf16 %v3024_v15, %v519_v30  ;;  %v2974_v30 = vld [vmem:[%s3579_s1 + $0x80] sm:$0xff]   ;;  %v2324_v47 = vld [vmem:[%s3089_s10 + $0xb8] sm:$0xf] }
  0x2c   : > { %2719 = vmatmul.mubr.bf16.vlgmr.msra.gmra.mxu0 %v2268_v42  ;;  %v2321_v42 = vld [vmem:[%s3089_s10 + $0xa0] sm:$0xf] }
  0x2d   : > { %2743 = vmatmul.mubr.bf16.vlgmr.msra.gmra.mxu1 %v2280_v49  ;;  %2751 = vmatpush3.bf16.msra.mxu0 %v2960_v35  ;;  %v534_v35 = vmax.bf16 %v3024_v15, %v518_v24  ;;  %v2971_v49 = vld [vmem:[%s3579_s1 + $0xd0] sm:$0xff]   ;;  %v3210_v62 = vmax.bf16 %v3024_v15, %v2321_v42  ;;  %v621_v24 = vshll.u32 %v538_v10, 16  ;;  %v2976_v42 = vld [vmem:[%s3579_s1 + $0x138] sm:$0xff]  }
  0x2e   : > { %2775 = vmatpush3.bf16.msra.mxu1 %v2961_v36  ;;  %2752 = vmatprep.subr.bf16.mxu0 %v2962_v43  ;;  %v576_v36 = vshrl.u32 %v532_v25, 16  ;;  %v627_v25 = vshll.u32 %v539_v11, 16 }
  0x2f   : > { %2776 = vmatprep.subr.bf16.mxu1 %v2963_v52  ;;  %2722 = vmatprep.mubr.bf16.mxu0 %v2269_v53  ;;  %v590_v48 = vshrl.u32 %v534_v35, 16  ;;  %v599_v53 = vshll.u32 %v535_v40, 16  ;;  %v623_v34 = vrot.slane %v621_v24, 5  ;;  %v543_v40 = vmax.bf16 %v3024_v15, %v527_v14  ;;  %v2980_v14 = vld [vmem:[%s3579_s1 + $0x128] sm:$0xff]   ;;  %v2392_v24 = vld [vmem:[%s3089_s10 + $0x94] sm:$0x1] }
  0x30   : > { %2746 = vmatprep.mubr.bf16.mxu1 %v2281_v54  ;;  %v578_v46 = vrot.slane %v576_v36, 4  ;;  %v560_v54 = vsel %vm3192_vm2, %v555_v45, %v559_v26  ;;  %v610_v36 = vor.u32 %v609_v28, %v606_v27  ;;  %v629_v38 = vrot.slane %v627_v25, 5  ;;  %v2393_v25 = vld [vmem:[%s3089_s10 + $0x98] sm:$0xf] }
  0x31   : > { %2753 = vmatpush3.bf16.msra.mxu0 %v2962_v43  ;;  %v2322_v43 = vld [vmem:[%s3089_s10 + $0xa8] sm:$0xf]  ;;  %v592_v56 = vrot.slane %v590_v48, 4  ;;  %v2307_v61 = vcombine.low %v560_v54, %v574_v57  ;;  %v1187_v27 = vmax.bf16 %v3024_v15, %v2391_v20 }
  0x32   : > { %2777 = vmatpush3.bf16.msra.mxu1 %v2963_v52  ;;  %2754 = vmatprep.subr.bf16.mxu0 %v2964_v59  ;;  %v593_v52 = vshll.u32 %v534_v35, 16  ;;  %v582_v58 = vor.u32 %v581_v51, %v578_v46  ;;  %v2975_v35 = vld [vmem:[%s3579_s1 + $0xc0] sm:$0xff]   ;;  %v611_v48 = vrot.slane %v610_v36, 4  ;;  %v655_v51 = vshll.u32 %v543_v40, 16  ;;  %v2397_v40 = vld [vmem:[%s3089_s10 + $0xa8] sm:$0xf] }
  0x33   : > { %2778 = vmatprep.subr.bf16.mxu1 %v2965_v60  ;;  %v1204_v36 = vshrl.u32 %v1187_v27, 16  ;;  %v2988_v20 = vld [vmem:[%s3579_s1 + $0x108] sm:$0xff]  }
  0x34   : > { %2723 = vmatmul.mubr.bf16.gmra.mxu0 %v2270_v63  ;;  %v3213_v63 = vmax.bf16 %v3024_v15, %v2322_v43  ;;  %v624_v43 = vor.u32 %v623_v34, %v620_v33  ;;  %v2395_v34 = vld [vmem:[%s3089_s10 + $0xa0] sm:$0xf] }
  0x35   : > { %2755 = vmatpush3.bf16.msra.mxu0 %v2964_v59  ;;  %2747 = vmatmul.mubr.bf16.gmra.mxu1 %v2282_v4  ;;  %v595_v59 = vrot.slane %v593_v52, 5  ;;  %v583_v4 = vrot.slane %v582_v58, 4 }
  0x36   : > { %2779 = vmatpush3.bf16.msra.mxu1 %v2965_v60  ;;  %2756 = vmatprep.subr.bf16.mxu0 %v2966_v9  ;;  %v601_v60 = vrot.slane %v599_v53, 5  ;;  %v625_v52 = vrot.slane %v624_v43, 4 }
  0x37   : > { %2780 = vmatprep.subr.bf16.mxu1 %v2967_v16  ;;  %2790 = vmatprep.mubr.bf16.mxu1 %v2343_v29  ;;  %v596_v5 = vor.u32 %v595_v59, %v592_v56  ;;  %v588_v18 = vsel %vm3192_vm2, %v583_v4, %v587_v55  ;;  %v541_v29 = vmax.bf16 %v3024_v15, %v525_v12  ;;  %v2977_v56 = vld [vmem:[%s3579_s1 + $0x178] sm:$0xff]   ;;  %v651_v59 = vrot.slane %v649_v50, 5  ;;  %v2326_v4 = vld [vmem:[%s3089_s10 + $0xc8] sm:$0xf] }
  0x38   : > { %2766 = vmatprep.mubr.bf16.mxu0 %v2307_v61  ;;  %v2325_v61 = vld [vmem:[%s3089_s10 + $0xc0] sm:$0xf]  ;;  %v630_v0 = vsel %vm3192_vm2, %v625_v52, %v629_v38  ;;  %v1207_v38 = vshll.u32 %v1187_v27, 16  ;;  %v2984_v50 = vld [vmem:[%s3579_s1 + $0x118] sm:$0xff]   ;;  %v2399_v27 = vld [vmem:[%s3089_s10 + $0xb0] sm:$0xf] }
  0x39   : > { %2757 = vmatpush3.bf16.msra.mxu0 %v2966_v9  ;;  %v524_v9 = vld [vmem:[%s3089_s10 + $0x30] sm:$0xf]  ;;  %v597_v19 = vrot.slane %v596_v5, 4  ;;  %v641_v46 = vshll.u32 %v541_v29, 16  ;;  %v2344_v5 = vcombine.low %v3210_v62, %v3213_v63  ;;  %v828_v63 = vmax.bf16 %v3024_v15, %v2325_v61  ;;  %v2982_v29 = vld [vmem:[%s3579_s1 + $0x120] sm:$0xff]  }
  0x3a   : > { %2781 = vmatpush3.bf16.msra.mxu1 %v2967_v16  ;;  %2758 = vmatprep.subr.bf16.mxu0 %v2968_v31  ;;  %v540_v16 = vmax.bf16 %v3024_v15, %v524_v9  ;;  %v2979_v9 = vld [vmem:[%s3579_s1 + $0x170] sm:$0xff]   ;;  %v1193_v61 = vmax.bf16 %v3024_v15, %v2397_v40 }
  0x3b   : > { %2782 = vmatprep.subr.bf16.mxu1 %v2969_v32  ;;  %v602_v26 = vsel %vm3192_vm2, %v597_v19, %v601_v60  ;;  %v643_v55 = vrot.slane %v641_v46, 5  ;;  %v657_v60 = vrot.slane %v655_v51, 5  ;;  %v2356_v19 = vld [vmem:[%s3089_s10 + $0xe0] sm:$0xf]  ;;  %v2398_v46 = vld [vmem:[%s3089_s10 + $0xac] sm:$0x1] }
  0x3c   : > { %v635_v45 = vshll.u32 %v540_v16, 16  ;;  %v1002_v23 = vmax.bf16 %v3024_v15, %v2356_v19  ;;  %v2359_v19 = vld [vmem:[%s3089_s10 + $0xf8] sm:$0xf] }
  0x3d   : > { %2759 = vmatpush3.bf16.msra.mxu0 %v2968_v31  ;;  %v2308_v31 = vcombine.low %v588_v18, %v602_v26  ;;  %v2355_v18 = vld [vmem:[%s3089_s10 + $0xd8] sm:$0xf]  ;;  %v2394_v26 = vld [vmem:[%s3089_s10 + $0x9c] sm:$0x1] }
  0x3e   : > { %2783 = vmatpush3.bf16.msra.mxu1 %v2969_v32  ;;  %2760 = vmatprep.subr.bf16.mxu0 %v2970_v44  ;;  %v615_v32 = vrot.slane %v613_v22, 5  ;;  %v637_v54 = vrot.slane %v635_v45, 5  ;;  %v1001_v22 = vmax.bf16 %v3024_v15, %v2355_v18  ;;  %v1190_v33 = vmax.bf16 %v3024_v15, %v2394_v26  ;;  %v2357_v45 = vld [vmem:[%s3089_s10 + $0xe8] sm:$0xf] }
  0x3f   : > { %2784 = vmatprep.subr.bf16.mxu1 %v2971_v49 }
  0x40   : > { %v616_v57 = vsel %vm3192_vm2, %v611_v48, %v615_v32  ;;  %v1189_v32 = vmax.bf16 %v3024_v15, %v2393_v25  ;;  %v1209_v48 = vrot.slane %v1207_v38, 5 }
  0x41   : > { %2761 = vmatpush3.bf16.msra.mxu0 %v2970_v44  ;;  %v632_v44 = vshrl.u32 %v540_v16, 16  ;;  %v2309_v10 = vcombine.low %v616_v57, %v630_v0  ;;  %v829_v16 = vmax.bf16 %v3024_v15, %v2326_v4  ;;  %v1194_v0 = vmax.bf16 %v3024_v15, %v2398_v46 }
  0x42   : > { %2785 = vmatpush3.bf16.msra.mxu1 %v2971_v49  ;;  %2762 = vmatprep.subr.bf16.mxu0 %v2972_v3  ;;  %v646_v49 = vshrl.u32 %v542_v39, 16  ;;  %v2396_v39 = vld [vmem:[%s3089_s10 + $0xa4] sm:$0x1]  ;;  %v1221_v43 = vshll.u32 %v1189_v32, 16 }
  0x43   : > { %2786 = vmatprep.subr.bf16.mxu1 %v2973_v17  ;;  %v634_v53 = vrot.slane %v632_v44, 4  ;;  %v2346_v28 = vcombine.low %v828_v63, %v829_v16  ;;  %v1227_v44 = vshll.u32 %v1190_v33, 16  ;;  %v1192_v57 = vmax.bf16 %v3024_v15, %v2396_v39 }
  0x44   : > { %v648_v58 = vrot.slane %v646_v49, 4  ;;  %v1191_v49 = vmax.bf16 %v3024_v15, %v2395_v34  ;;  %v2402_v34 = vld [vmem:[%s3089_s10 + $0xbc] sm:$0x1] }
  0x45   : > { %2763 = vmatpush3.bf16.msra.mxu0 %v2972_v3  ;;  %v638_v1 = vor.u32 %v637_v54, %v634_v53  ;;  %v827_v3 = vmax.bf16 %v3024_v15, %v2324_v47  ;;  %v1206_v47 = vrot.slane %v1204_v36, 4  ;;  %v1223_v53 = vrot.slane %v1221_v43, 5  ;;  %v2358_v54 = vld [vmem:[%s3089_s10 + $0xf0] sm:$0xf]  ;;  %v2403_v36 = vld [vmem:[%s3089_s10 + $0xc0] sm:$0xf] }
  0x46   : > { %2787 = vmatpush3.bf16.msra.mxu1 %v2973_v17  ;;  %2764 = vmatprep.subr.bf16.mxu0 %v2974_v30  ;;  %v652_v6 = vor.u32 %v651_v59, %v648_v58  ;;  %v2981_v17 = vld [vmem:[%s3579_s1 + $0x168] sm:$0xff]   ;;  %v1232_v58 = vshrl.u32 %v1191_v49, 16  ;;  %v2985_v59 = vld [vmem:[%s3579_s1 + $0x158] sm:$0xff]  }
  0x47   : > { %2788 = vmatprep.subr.bf16.mxu1 %v2975_v35  ;;  %v639_v8 = vrot.slane %v638_v1, 4  ;;  %v2345_v62 = vcombine.low %v826_v2, %v827_v3  ;;  %v1235_v1 = vshll.u32 %v1191_v49, 16  ;;  %v3318_v3 = vmax.bf16 %v3024_v15, %v2357_v45  ;;  %v2405_v43 = vld [vmem:[%s3089_s10 + $0xc8] sm:$0xf]  ;;  %v2990_v49 = vld [vmem:[%s3579_s1 + $0x100] sm:$0xff]  }
  0x48   : > { %v653_v11 = vrot.slane %v652_v6, 4  ;;  %v1234_v4 = vrot.slane %v1232_v58, 4  ;;  %v1201_v58 = vmax.bf16 %v3024_v15, %v2405_v43 }
  0x49   : > { %2765 = vmatpush3.bf16.msra.mxu0 %v2974_v30  ;;  %v644_v12 = vsel %vm3192_vm2, %v639_v8, %v643_v55  ;;  %v2983_v30 = vld [vmem:[%s3579_s1 + $0x160] sm:$0xff]   ;;  %v1210_v55 = vor.u32 %v1209_v48, %v1206_v47  ;;  %v1246_v8 = vshrl.u32 %v1193_v61, 16  ;;  %v1199_v48 = vmax.bf16 %v3024_v15, %v2403_v36 }
  0x4a   : > { %2789 = vmatpush3.bf16.msra.mxu1 %v2975_v35  ;;  %2798 = vmatprep.subr.bf16.mxu0 %v2976_v42  ;;  %v658_v13 = vsel %vm3192_vm2, %v653_v11, %v657_v60  ;;  %v2379_v35 = vcombine.low %v1001_v22, %v1002_v23  ;;  %v2360_v22 = vld [vmem:[%s3089_s10 + $0x100] sm:$0xf] }
  0x4b   : > { %2822 = vmatprep.subr.bf16.mxu1 %v2977_v56  ;;  %v2310_v21 = vcombine.low %v644_v12, %v658_v13  ;;  %v1211_v2 = vrot.slane %v1210_v55, 4  ;;  %v1255_v12 = vshll.u32 %v1194_v0, 16  ;;  %v2987_v13 = vld [vmem:[%s3579_s1 + $0x150] sm:$0xff]   ;;  %v3356_v33 = vmax.bf16 %v3024_v15, %v2360_v22 }
  0x4c   : > { %2767 = vmatmul.mubr.bf16.vlgmr.msra.gmra.mxu0 %v2308_v31  ;;  %v1188_v31 = vmax.bf16 %v3024_v15, %v2392_v24 }
  0x4d   : > { %2791 = vmatmul.mubr.bf16.vlgmr.msra.gmra.mxu1 %v2344_v5  ;;  %2799 = vmatpush3.bf16.msra.mxu0 %v2976_v42  ;;  %v1218_v42 = vshrl.u32 %v1189_v32, 16  ;;  %v1241_v5 = vshll.u32 %v1192_v57, 16  ;;  %v3342_v25 = vrot.slane %v1255_v12, 5  ;;  %v3353_v32 = vmax.bf16 %v3024_v15, %v2359_v19  ;;  %v2362_v12 = vld [vmem:[%s3089_s10 + $0x110] sm:$0xf] }
  0x4e   : > { %2823 = vmatpush3.bf16.msra.mxu1 %v2977_v56  ;;  %2800 = vmatprep.subr.bf16.mxu0 %v2978_v7  ;;  %v1213_v41 = vshll.u32 %v1188_v31, 16  ;;  %v1229_v56 = vrot.slane %v1227_v44, 5  ;;  %v2406_v44 = vld [vmem:[%s3089_s10 + $0xcc] sm:$0x1]  ;;  %v2994_v19 = vld [vmem:[%s3579_s1 + $0x1b0] sm:$0xff]   ;;  %v1008_v36 = vmax.bf16 %v3024_v15, %v2362_v12 }
  0x4f   : > { %2824 = vmatprep.subr.bf16.mxu1 %v2979_v9  ;;  %2770 = vmatprep.mubr.bf16.mxu0 %v2309_v10  ;;  %v1220_v52 = vrot.slane %v1218_v42, 4  ;;  %v2986_v10 = vld [vmem:[%s3579_s1 + $0x110] sm:$0xff]   ;;  %v3328_v63 = vrot.slane %v1241_v5, 5  ;;  %v2404_v42 = vld [vmem:[%s3089_s10 + $0xc4] sm:$0x1]  ;;  %v1202_v0 = vmax.bf16 %v3024_v15, %v2406_v44  ;;  %v1288_v5 = vshrl.u32 %v1199_v48, 16 }
  0x50   : > { %2794 = vmatprep.mubr.bf16.mxu1 %v2345_v62  ;;  %v1215_v51 = vrot.slane %v1213_v41, 5  ;;  %v3326_v62 = vmax.bf16 %v3024_v15, %v2358_v54  ;;  %v1198_v41 = vmax.bf16 %v3024_v15, %v2402_v34  ;;  %v2991_v54 = vld [vmem:[%s3579_s1 + $0x140] sm:$0xff]  }
  0x51   : > { %2801 = vmatpush3.bf16.msra.mxu0 %v2978_v7  ;;  %v1224_v60 = vor.u32 %v1223_v53, %v1220_v52  ;;  %v1237_v7 = vrot.slane %v1235_v1, 5  ;;  %v1200_v53 = vmax.bf16 %v3024_v15, %v2404_v42  ;;  %v2992_v1 = vld [vmem:[%s3579_s1 + $0x1b8] sm:$0xff]   ;;  %v2997_v42 = vld [vmem:[%s3579_s1 + $0x1e8] sm:$0xff]  }
  0x52   : > { %2825 = vmatpush3.bf16.msra.mxu1 %v2979_v9  ;;  %2802 = vmatprep.subr.bf16.mxu0 %v2980_v14  ;;  %v1249_v9 = vshll.u32 %v1193_v61, 16  ;;  %v1216_v11 = vsel %vm3192_vm2, %v1211_v2, %v1215_v51  ;;  %v2380_v26 = vcombine.low %v3318_v3, %v3326_v62  ;;  %v1283_v57 = vshll.u32 %v1198_v41, 16  ;;  %v2472_v41 = vld [vmem:[%s3089_s10 + $0x58] sm:$0xf] }
  0x53   : > { %2826 = vmatprep.subr.bf16.mxu1 %v2981_v17  ;;  %v1225_v6 = vrot.slane %v1224_v60, 4  ;;  %v1238_v16 = vor.u32 %v1237_v7, %v1234_v4  ;;  %v2993_v7 = vld [vmem:[%s3579_s1 + $0x1f8] sm:$0xff]  }
  0x54   : > { %2771 = vmatmul.mubr.bf16.gmra.mxu0 %v2310_v21  ;;  %v1251_v18 = vrot.slane %v1249_v9, 5  ;;  %v1285_v4 = vrot.slane %v1283_v57, 5  ;;  %v1297_v9 = vshll.u32 %v1200_v53, 16  ;;  %v3000_v53 = vld [vmem:[%s3579_s1 + $0x198] sm:$0xff]   ;;  %v2507_v57 = vld [vmem:[%s3089_s10 + $0x8] sm:$0xf] }
  0x55   : > { %2803 = vmatpush3.bf16.msra.mxu0 %v2980_v14  ;;  %2795 = vmatmul.mubr.bf16.gmra.mxu1 %v2346_v28  ;;  %v1230_v14 = vsel %vm3192_vm2, %v1225_v6, %v1229_v56  ;;  %v3340_v23 = vrot.slane %v1238_v16, 4  ;;  %v2400_v28 = vld [vmem:[%s3089_s10 + $0xb4] sm:$0x1]  ;;  %v1291_v6 = vshll.u32 %v1199_v48, 16 }
  0x56   : > { %2827 = vmatpush3.bf16.msra.mxu1 %v2981_v17  ;;  %2804 = vmatprep.subr.bf16.mxu0 %v2982_v29  ;;  %v1248_v17 = vrot.slane %v1246_v8, 4  ;;  %v2423_v21 = vcombine.low %v1216_v11, %v1230_v14  ;;  %v1196_v39 = vmax.bf16 %v3024_v15, %v2400_v28  ;;  %v1305_v11 = vshll.u32 %v1201_v58, 16 }
  0x57   : > { %2828 = vmatprep.subr.bf16.mxu1 %v2983_v30  ;;  %2814 = vmatprep.mubr.bf16.mxu0 %v2379_v35  ;;  %v1195_v35 = vmax.bf16 %v3024_v15, %v2399_v27  ;;  %v1244_v38 = vsel %vm3192_vm2, %v3340_v23, %v3328_v63  ;;  %v2361_v63 = vld [vmem:[%s3089_s10 + $0x108] sm:$0xf]  ;;  %v1290_v14 = vrot.slane %v1288_v5, 4  ;;  %v1293_v16 = vrot.slane %v1291_v6, 5  ;;  %v2438_v6 = vld [vmem:[%s3089_s10 + $0x20] sm:$0xf] }
  0x58   : > { %v1252_v24 = vor.u32 %v1251_v18, %v1248_v17  ;;  %2838 = vmatprep.mubr.bf16.mxu1 %v2423_v21  ;;  %v1311_v17 = vshll.u32 %v1202_v0, 16  ;;  %v1307_v22 = vrot.slane %v1305_v11, 5  ;;  %v2515_v0 = vld [vmem:[%s3089_s10 + $0x28] sm:$0xf]  ;;  %v2516_v11 = vld [vmem:[%s3089_s10 + $0x2c] sm:$0x1] }
  0x59   : > { %2805 = vmatpush3.bf16.msra.mxu0 %v2982_v29  ;;  %v2401_v29 = vld [vmem:[%s3089_s10 + $0xb8] sm:$0xf]  ;;  %v1260_v46 = vshrl.u32 %v1195_v35, 16  ;;  %v1263_v47 = vshll.u32 %v1195_v35, 16  ;;  %v1007_v35 = vmax.bf16 %v3024_v15, %v2361_v63  ;;  %v1851_v5 = vmax.bf16 %v3024_v15, %v2515_v0  ;;  %v3009_v0 = vld [vmem:[%s3579_s1 + $0x230] sm:$0xff]  }
  0x5a   : > { %2829 = vmatpush3.bf16.msra.mxu1 %v2983_v30  ;;  %2806 = vmatprep.subr.bf16.mxu0 %v2984_v50  ;;  %v2989_v30 = vld [vmem:[%s3579_s1 + $0x148] sm:$0xff]   ;;  %v1253_v31 = vrot.slane %v1252_v24, 4  ;;  %v1197_v40 = vmax.bf16 %v3024_v15, %v2401_v29  ;;  %v1294_v24 = vor.u32 %v1293_v16, %v1290_v14  ;;  %v1313_v27 = vrot.slane %v1311_v17, 5  ;;  %v2518_v17 = vld [vmem:[%s3089_s10 + $0x34] sm:$0x1] }
  0x5b   : > { %2830 = vmatprep.subr.bf16.mxu1 %v2985_v59  ;;  %v1262_v55 = vrot.slane %v1260_v46, 4  ;;  %v1265_v56 = vrot.slane %v1263_v47, 5  ;;  %v1658_v47 = vmax.bf16 %v3024_v15, %v2472_v41 }
  0x5c   : > { %v1258_v45 = vsel %vm3192_vm2, %v1253_v31, %v3342_v25  ;;  %v1274_v51 = vshrl.u32 %v1197_v40, 16  ;;  %v1277_v52 = vshll.u32 %v1197_v40, 16  ;;  %v1299_v25 = vrot.slane %v1297_v9, 5  ;;  %v2508_v9 = vld [vmem:[%s3089_s10 + $0xc] sm:$0x1] }
  0x5d   : > { %2807 = vmatpush3.bf16.msra.mxu0 %v2984_v50  ;;  %v1269_v50 = vshll.u32 %v1196_v39, 16  ;;  %v1266_v2 = vor.u32 %v1265_v56, %v1262_v55  ;;  %v2424_v18 = vcombine.low %v1244_v38, %v1258_v45  ;;  %v2381_v31 = vcombine.low %v3353_v32, %v3356_v33  ;;  %v2996_v38 = vld [vmem:[%s3579_s1 + $0x1a8] sm:$0xff]   ;;  %v2471_v33 = vld [vmem:[%s3089_s10 + $0x50] sm:$0xf] }
  0x5e   : > { %2831 = vmatpush3.bf16.msra.mxu1 %v2985_v59  ;;  %2808 = vmatprep.subr.bf16.mxu0 %v2986_v10  ;;  %v1276_v60 = vrot.slane %v1274_v51, 4  ;;  %v1279_v61 = vrot.slane %v1277_v52, 5  ;;  %v1295_v34 = vrot.slane %v1294_v24, 4  ;;  %v2435_v32 = vld [vmem:[%s3089_s10 + $0x8] sm:$0xf]  ;;  %v2382_v45 = vcombine.low %v1007_v35, %v1008_v36  ;;  %v3002_v55 = vld [vmem:[%s3579_s1 + $0x190] sm:$0xff]  }
  0x5f   : > { %2832 = vmatprep.subr.bf16.mxu1 %v2987_v13  ;;  %v1271_v59 = vrot.slane %v1269_v50, 5  ;;  %v1478_v43 = vmax.bf16 %v3024_v15, %v2435_v32  ;;  %v1657_v46 = vmax.bf16 %v3024_v15, %v2471_v33  ;;  %v2999_v50 = vld [vmem:[%s3579_s1 + $0x1e0] sm:$0xff]   ;;  %v3003_v56 = vld [vmem:[%s3579_s1 + $0x1d0] sm:$0xff]   ;;  %v1852_v36 = vmax.bf16 %v3024_v15, %v2516_v11 }
  0x60   : > { %v1280_v8 = vor.u32 %v1279_v61, %v1276_v60  ;;  %v1300_v3 = vsel %vm3192_vm2, %v1295_v34, %v1299_v25  ;;  %v1843_v60 = vmax.bf16 %v3024_v15, %v2507_v57  ;;  %v1844_v34 = vmax.bf16 %v3024_v15, %v2508_v9 }
  0x61   : > { %2809 = vmatpush3.bf16.msra.mxu0 %v2986_v10  ;;  %v1302_v10 = vshrl.u32 %v1201_v58, 16  ;;  %v2495_v52 = vcombine.low %v1657_v46, %v1658_v47  ;;  %v2509_v58 = vld [vmem:[%s3089_s10 + $0x10] sm:$0xf] }
  0x62   : > { %2833 = vmatpush3.bf16.msra.mxu1 %v2987_v13  ;;  %2810 = vmatprep.subr.bf16.mxu0 %v2988_v20  ;;  %v1267_v13 = vrot.slane %v1266_v2, 4  ;;  %v1845_v61 = vmax.bf16 %v3024_v15, %v2509_v58  ;;  %v2437_v2 = vld [vmem:[%s3089_s10 + $0x18] sm:$0xf]  ;;  %v1860_v12 = vshrl.u32 %v1843_v60, 16 }
  0x63   : > { %2834 = vmatprep.subr.bf16.mxu1 %v2989_v30  ;;  %v1304_v21 = vrot.slane %v1302_v10, 4  ;;  %v2510_v10 = vld [vmem:[%s3089_s10 + $0x14] sm:$0x1] }
  0x64   : > { %v1272_v23 = vsel %vm3192_vm2, %v1267_v13, %v1271_v59  ;;  %v3004_v59 = vld [vmem:[%s3579_s1 + $0x188] sm:$0xff]   ;;  %v1863_v13 = vshll.u32 %v1843_v60, 16  ;;  %v1874_v14 = vshrl.u32 %v1845_v61, 16  ;;  %v1877_v16 = vshll.u32 %v1845_v61, 16 }
  0x65   : > { %2811 = vmatpush3.bf16.msra.mxu0 %v2988_v20  ;;  %v1281_v20 = vrot.slane %v1280_v8, 4  ;;  %v1308_v29 = vor.u32 %v1307_v22, %v1304_v21  ;;  %v2474_v8 = vld [vmem:[%s3089_s10 + $0x68] sm:$0xf]  ;;  %v1919_v21 = vshll.u32 %v1851_v5, 16  ;;  %v3006_v22 = vld [vmem:[%s3579_s1 + $0x180] sm:$0xff]   ;;  %v1846_v35 = vmax.bf16 %v3024_v15, %v2510_v10 }
  0x66   : > { %2835 = vmatpush3.bf16.msra.mxu1 %v2989_v30  ;;  %2812 = vmatprep.subr.bf16.mxu0 %v2990_v49  ;;  %v2995_v30 = vld [vmem:[%s3579_s1 + $0x1f0] sm:$0xff]   ;;  %v1660_v25 = vmax.bf16 %v3024_v15, %v2474_v8  ;;  %v1865_v32 = vrot.slane %v1863_v13, 5 }
  0x67   : > { %2836 = vmatprep.subr.bf16.mxu1 %v2991_v54  ;;  %v1286_v28 = vsel %vm3192_vm2, %v1281_v20, %v1285_v4  ;;  %v1309_v40 = vrot.slane %v1308_v29, 4  ;;  %v2517_v4 = vld [vmem:[%s3089_s10 + $0x30] sm:$0xf]  ;;  %v1916_v20 = vshrl.u32 %v1851_v5, 16  ;;  %v2439_v29 = vld [vmem:[%s3089_s10 + $0x28] sm:$0xf] }
  0x68   : > { %v2425_v39 = vcombine.low %v1272_v23, %v1286_v28  ;;  %v1853_v63 = vmax.bf16 %v3024_v15, %v2517_v4  ;;  %v3007_v23 = vld [vmem:[%s3579_s1 + $0x1c0] sm:$0xff]   ;;  %v1921_v33 = vrot.slane %v1919_v21, 5  ;;  %v1482_v46 = vmax.bf16 %v3024_v15, %v2439_v29 }
  0x69   : > { %2813 = vmatpush3.bf16.msra.mxu0 %v2990_v49  ;;  %v1314_v62 = vsel %vm3192_vm2, %v1309_v40, %v1313_v27  ;;  %v2998_v49 = vld [vmem:[%s3579_s1 + $0x1a0] sm:$0xff]   ;;  %v1862_v40 = vrot.slane %v1860_v12, 4  ;;  %v1883_v57 = vshll.u32 %v1846_v35, 16 }
  0x6a   : > { %2837 = vmatpush3.bf16.msra.mxu1 %v2991_v54  ;;  %2846 = vmatprep.subr.bf16.mxu0 %v2992_v1  ;;  %v2426_v48 = vcombine.low %v1300_v3, %v1314_v62  ;;  %v3001_v54 = vld [vmem:[%s3579_s1 + $0x1d8] sm:$0xff]   ;;  %v1930_v27 = vshrl.u32 %v1853_v63, 16  ;;  %v1933_v28 = vshll.u32 %v1853_v63, 16  ;;  %v1876_v3 = vrot.slane %v1874_v14, 4 }
  0x6b   : > { %2870 = vmatprep.subr.bf16.mxu1 %v2993_v7  ;;  %v1879_v62 = vrot.slane %v1877_v16, 5  ;;  %v1885_v11 = vrot.slane %v1883_v57, 5  ;;  %v2511_v16 = vld [vmem:[%s3089_s10 + $0x18] sm:$0xf] }
  0x6c   : > { %2815 = vmatmul.mubr.bf16.vlgmr.msra.gmra.mxu0 %v2380_v26  ;;  %v2436_v26 = vld [vmem:[%s3089_s10 + $0x10] sm:$0xf]  ;;  %v1932_v41 = vrot.slane %v1930_v27, 4 }
  0x6d   : > { %2839 = vmatmul.mubr.bf16.vlgmr.msra.gmra.mxu1 %v2424_v18  ;;  %2847 = vmatpush3.bf16.msra.mxu0 %v2992_v1  ;;  %v1479_v44 = vmax.bf16 %v3024_v15, %v2436_v26  ;;  %v3005_v1 = vld [vmem:[%s3579_s1 + $0x1c8] sm:$0xff]   ;;  %v3468_v18 = vmax.bf16 %v3024_v15, %v2437_v2  ;;  %v1918_v26 = vrot.slane %v1916_v20, 4  ;;  %v2521_v20 = vld [vmem:[%s3089_s10 + $0x40] sm:$0xf] }
  0x6e   : > { %2871 = vmatpush3.bf16.msra.mxu1 %v2993_v7  ;;  %2848 = vmatprep.subr.bf16.mxu0 %v2994_v19  ;;  %v2473_v7 = vld [vmem:[%s3089_s10 + $0x60] sm:$0xf] }
  0x6f   : > { %2872 = vmatprep.subr.bf16.mxu1 %v2995_v30  ;;  %2818 = vmatprep.mubr.bf16.mxu0 %v2381_v31  ;;  %v2459_v51 = vcombine.low %v1478_v43, %v1479_v44  ;;  %v1659_v24 = vmax.bf16 %v3024_v15, %v2473_v7  ;;  %v2475_v31 = vld [vmem:[%s3089_s10 + $0x70] sm:$0xf]  ;;  %v1922_v58 = vor.u32 %v1921_v33, %v1918_v26  ;;  %v2520_v33 = vld [vmem:[%s3089_s10 + $0x3c] sm:$0x1] }
  0x70   : > { %2842 = vmatprep.mubr.bf16.mxu1 %v2425_v39  ;;  %v2476_v39 = vld [vmem:[%s3089_s10 + $0x78] sm:$0xf] }
  0x71   : > { %2849 = vmatpush3.bf16.msra.mxu0 %v2994_v19  ;;  %v1481_v19 = vmax.bf16 %v3024_v15, %v2438_v6  ;;  %v2496_v44 = vcombine.low %v1659_v24, %v1660_v25  ;;  %v1923_v63 = vrot.slane %v1922_v58, 4  ;;  %v1847_v24 = vmax.bf16 %v3024_v15, %v2511_v16 }
  0x72   : > { %2873 = vmatpush3.bf16.msra.mxu1 %v2995_v30  ;;  %2850 = vmatprep.subr.bf16.mxu0 %v2996_v38  ;;  %v2440_v30 = vld [vmem:[%s3089_s10 + $0x30] sm:$0xf] }
  0x73   : > { %2874 = vmatprep.subr.bf16.mxu1 %v2997_v42  ;;  %v2460_v43 = vcombine.low %v3468_v18, %v1481_v19  ;;  %v1483_v47 = vmax.bf16 %v3024_v15, %v2440_v30  ;;  %v2513_v18 = vld [vmem:[%s3089_s10 + $0x20] sm:$0xf]  ;;  %v2519_v19 = vld [vmem:[%s3089_s10 + $0x38] sm:$0xf] }
  0x74   : > { %2819 = vmatmul.mubr.bf16.gmra.mxu0 %v2382_v45  ;;  %v3008_v45 = vld [vmem:[%s3579_s1 + $0x238] sm:$0xff]   ;;  %v1849_v29 = vmax.bf16 %v3024_v15, %v2513_v18  ;;  %v3011_v30 = vld [vmem:[%s3579_s1 + $0x220] sm:$0xff]  }
  0x75   : > { %2851 = vmatpush3.bf16.msra.mxu0 %v2996_v38  ;;  %2843 = vmatmul.mubr.bf16.gmra.mxu1 %v2426_v48  ;;  %v1854_v38 = vmax.bf16 %v3024_v15, %v2518_v17  ;;  %v2441_v48 = vld [vmem:[%s3089_s10 + $0x38] sm:$0xf]  ;;  %v2461_v4 = vcombine.low %v1482_v46, %v1483_v47  ;;  %v3010_v17 = vld [vmem:[%s3579_s1 + $0x228] sm:$0xff]  }
  0x76   : > { %2875 = vmatpush3.bf16.msra.mxu1 %v2997_v42  ;;  %2852 = vmatprep.subr.bf16.mxu0 %v2998_v49  ;;  %v1935_v42 = vrot.slane %v1933_v28, 5  ;;  %v1905_v26 = vshll.u32 %v1849_v29, 16 }
  0x77   : > { %2876 = vmatprep.subr.bf16.mxu1 %v2999_v50  ;;  %2862 = vmatprep.mubr.bf16.mxu0 %v2459_v51  ;;  %v1662_v51 = vmax.bf16 %v3024_v15, %v2476_v39  ;;  %v1939_v61 = vshll.u32 %v1854_v38, 16  ;;  %v2512_v39 = vld [vmem:[%s3089_s10 + $0x1c] sm:$0x1] }
  0x78   : > { %2886 = vmatprep.mubr.bf16.mxu1 %v2495_v52  ;;  %v2477_v52 = vld [vmem:[%s3089_s10 + $0x80] sm:$0xf]  ;;  %v1936_v60 = vor.u32 %v1935_v42, %v1932_v41  ;;  %v2522_v41 = vld [vmem:[%s3089_s10 + $0x44] sm:$0x1]  ;;  %v1848_v46 = vmax.bf16 %v3024_v15, %v2512_v39 }
  0x79   : > { %2853 = vmatpush3.bf16.msra.mxu0 %v2998_v49  ;;  %v2442_v49 = vld [vmem:[%s3089_s10 + $0x40] sm:$0xf]  ;;  %v1663_v6 = vmax.bf16 %v3024_v15, %v2477_v52  ;;  %v1941_v14 = vrot.slane %v1939_v61, 5  ;;  %v1856_v52 = vmax.bf16 %v3024_v15, %v2520_v33 }
  0x7a   : > { %2877 = vmatpush3.bf16.msra.mxu1 %v2999_v50  ;;  %2854 = vmatprep.subr.bf16.mxu0 %v3000_v53  ;;  %v1661_v50 = vmax.bf16 %v3024_v15, %v2475_v31  ;;  %v1485_v2 = vmax.bf16 %v3024_v15, %v2442_v49  ;;  %v1937_v13 = vrot.slane %v1936_v60, 4  ;;  %v1855_v31 = vmax.bf16 %v3024_v15, %v2519_v19 }
  0x7b   : > { %2878 = vmatprep.subr.bf16.mxu1 %v3001_v54  ;;  %v1897_v60 = vshll.u32 %v1848_v46, 16 }
  0x7c   : > { %v2497_v5 = vcombine.low %v1661_v50, %v1662_v51  ;;  %v1942_v28 = vsel %vm3192_vm2, %v1937_v13, %v1941_v14  ;;  %v1944_v42 = vshrl.u32 %v1855_v31, 16  ;;  %v1907_v51 = vrot.slane %v1905_v26, 5 }
  0x7d   : > { %2855 = vmatpush3.bf16.msra.mxu0 %v3000_v53  ;;  %v2478_v53 = vld [vmem:[%s3089_s10 + $0x88] sm:$0xf] }
  0x7e   : > { %2879 = vmatpush3.bf16.msra.mxu1 %v3001_v54  ;;  %2856 = vmatprep.subr.bf16.mxu0 %v3002_v55  ;;  %v1866_v54 = vor.u32 %v1865_v32, %v1862_v40  ;;  %v1664_v7 = vmax.bf16 %v3024_v15, %v2478_v53  ;;  %v1888_v40 = vshrl.u32 %v1847_v24, 16  ;;  %v1891_v32 = vshll.u32 %v1847_v24, 16 }
  0x7f   : > { %2880 = vmatprep.subr.bf16.mxu1 %v3003_v56  ;;  %v1858_v53 = vmax.bf16 %v3024_v15, %v2522_v41 }
  0x80   : > { %v1867_v8 = vrot.slane %v1866_v54, 4  ;;  %v2498_v25 = vcombine.low %v1663_v6, %v1664_v7  ;;  %v1893_v49 = vrot.slane %v1891_v32, 5  ;;  %v3013_v54 = vld [vmem:[%s3579_s1 + $0x210] sm:$0xff]   ;;  %v1899_v7 = vrot.slane %v1897_v60, 5 }
  0x81   : > { %2857 = vmatpush3.bf16.msra.mxu0 %v3002_v55  ;;  %v1869_v55 = vshll.u32 %v1844_v34, 16  ;;  %v1857_v34 = vmax.bf16 %v3024_v15, %v2521_v20 }
  0x82   : > { %2881 = vmatpush3.bf16.msra.mxu1 %v3003_v56  ;;  %2858 = vmatprep.subr.bf16.mxu0 %v3004_v59  ;;  %v1880_v56 = vor.u32 %v1879_v62, %v1876_v3  ;;  %v2514_v3 = vld [vmem:[%s3089_s10 + $0x24] sm:$0x1]  ;;  %v1902_v62 = vshrl.u32 %v1849_v29, 16 }
  0x83   : > { %2882 = vmatprep.subr.bf16.mxu1 %v3005_v1  ;;  %v1871_v9 = vrot.slane %v1869_v55, 5  ;;  %v1850_v47 = vmax.bf16 %v3024_v15, %v2514_v3  ;;  %v1946_v55 = vrot.slane %v1944_v42, 4 }
  0x84   : > { %v1881_v10 = vrot.slane %v1880_v56, 4  ;;  %v1904_v50 = vrot.slane %v1902_v62, 4 }
  0x85   : > { %2859 = vmatpush3.bf16.msra.mxu0 %v3004_v59  ;;  %v1925_v59 = vshll.u32 %v1852_v36, 16  ;;  %v3012_v36 = vld [vmem:[%s3579_s1 + $0x218] sm:$0xff]  }
  0x86   : > { %2883 = vmatpush3.bf16.msra.mxu1 %v3005_v1  ;;  %2860 = vmatprep.subr.bf16.mxu0 %v3006_v22  ;;  %v1484_v1 = vmax.bf16 %v3024_v15, %v2441_v48  ;;  %v1890_v48 = vrot.slane %v1888_v40, 4  ;;  %v1908_v61 = vor.u32 %v1907_v51, %v1904_v50  ;;  %v3014_v15 = vld [vmem:[%s3579_s1 + $0x208] sm:$0xff]  }
  0x87   : > { %2884 = vmatprep.subr.bf16.mxu1 %v3007_v23  ;;  %v1927_v12 = vrot.slane %v1925_v59, 5 }
  0x88   : > { %v2462_v21 = vcombine.low %v1484_v1, %v1485_v2  ;;  %v1894_v59 = vor.u32 %v1893_v49, %v1890_v48  ;;  %v1953_v2 = vshll.u32 %v1856_v52, 16 }
  0x89   : > { %2861 = vmatpush3.bf16.msra.mxu0 %v3006_v22  ;;  %v1872_v22 = vsel %vm3192_vm2, %v1867_v8, %v1871_v9  ;;  %v1928_v27 = vsel %vm3192_vm2, %v1923_v63, %v1927_v12  ;;  %v1909_v8 = vrot.slane %v1908_v61, 4 }
  0x8a   : > { %2885 = vmatpush3.bf16.msra.mxu1 %v3007_v23  ;;  %2894 = vmatprep.subr.bf16.mxu0 %v3008_v45  ;;  %v1886_v23 = vsel %vm3192_vm2, %v1881_v10, %v1885_v11  ;;  %v2541_v38 = vcombine.low %v1928_v27, %v1942_v28  ;;  %v1895_v6 = vrot.slane %v1894_v59, 4  ;;  %v3015_v10 = vld [vmem:[%s3579_s1 + $0x200] sm:$0xff]   ;;  %v1955_v63 = vrot.slane %v1953_v2, 5 }
  0x8b   : > { %2918 = vmatprep.subr.bf16.mxu1 %v3008_v45  ;;  %v2539_v35 = vcombine.low %v1872_v22, %v1886_v23 }
  0x8c   : > { %2863 = vmatmul.mubr.bf16.vlgmr.msra.gmra.mxu0 %v2460_v43  ;;  %v1947_v43 = vshll.u32 %v1855_v31, 16  ;;  %v1900_v14 = vsel %vm3192_vm2, %v1895_v6, %v1899_v7 }
  0x8d   : > { %2887 = vmatmul.mubr.bf16.vlgmr.msra.gmra.mxu1 %v2496_v44  ;;  %2895 = vmatpush3.bf16.msra.mxu0 %v3008_v45  ;;  %v1958_v44 = vshrl.u32 %v1857_v34, 16 }
  0x8e   : > { %2926 = vmatpush3.bf16.msra.mxu1 %v3008_v45  ;;  %2896 = vmatprep.subr.bf16.mxu0 %v3009_v0  ;;  %v1961_v45 = vshll.u32 %v1857_v34, 16  ;;  %v1949_v56 = vrot.slane %v1947_v43, 5 }
  0x8f   : > { %2919 = vmatprep.subr.bf16.mxu1 %v3009_v0  ;;  %2866 = vmatprep.mubr.bf16.mxu0 %v2461_v4  ;;  %v1960_v57 = vrot.slane %v1958_v44, 4 }
  0x90   : > { %2890 = vmatprep.mubr.bf16.mxu1 %v2497_v5  ;;  %v1963_v58 = vrot.slane %v1961_v45, 5  ;;  %v1950_v1 = vor.u32 %v1949_v56, %v1946_v55  ;;  %v1967_v5 = vshll.u32 %v1858_v53, 16 }
  0x91   : > { %2897 = vmatpush3.bf16.msra.mxu0 %v3009_v0 }
  0x92   : > { %2927 = vmatpush3.bf16.msra.mxu1 %v3009_v0  ;;  %2898 = vmatprep.subr.bf16.mxu0 %v3010_v17  ;;  %v1911_v0 = vshll.u32 %v1850_v47, 16  ;;  %v1964_v4 = vor.u32 %v1963_v58, %v1960_v57  ;;  %v1951_v11 = vrot.slane %v1950_v1, 4  ;;  %v1969_v13 = vrot.slane %v1967_v5, 5 }
  0x93   : > { %2920 = vmatprep.subr.bf16.mxu1 %v3010_v17 }
  0x94   : > { %2867 = vmatmul.mubr.bf16.gmra.mxu0 %v2462_v21  ;;  %v1913_v9 = vrot.slane %v1911_v0, 5  ;;  %v1965_v12 = vrot.slane %v1964_v4, 4 }
  0x95   : > { %2899 = vmatpush3.bf16.msra.mxu0 %v3010_v17  ;;  %2891 = vmatmul.mubr.bf16.gmra.mxu1 %v2498_v25 }
  0x96   : > { %2928 = vmatpush3.bf16.msra.mxu1 %v3010_v17  ;;  %2900 = vmatprep.subr.bf16.mxu0 %v3011_v30  ;;  %v1914_v16 = vsel %vm3192_vm2, %v1909_v8, %v1913_v9  ;;  %v1956_v17 = vsel %vm3192_vm2, %v1951_v11, %v1955_v63  ;;  %v1970_v18 = vsel %vm3192_vm2, %v1965_v12, %v1969_v13 }
  0x97   : > { %2921 = vmatprep.subr.bf16.mxu1 %v3011_v30  ;;  %2910 = vmatprep.mubr.bf16.mxu0 %v2539_v35  ;;  %v2540_v19 = vcombine.low %v1900_v14, %v1914_v16  ;;  %v2542_v20 = vcombine.low %v1956_v17, %v1970_v18 }
  0x98   : > { %2914 = vmatprep.mubr.bf16.mxu1 %v2541_v38 }
  0x99   : > { %2901 = vmatpush3.bf16.msra.mxu0 %v3011_v30 }
  0x9a   : > { %2929 = vmatpush3.bf16.msra.mxu1 %v3011_v30  ;;  %2902 = vmatprep.subr.bf16.mxu0 %v3012_v36 }
  0x9b   : > { %2922 = vmatprep.subr.bf16.mxu1 %v3012_v36 }
  0x9d   : > { %2903 = vmatpush3.bf16.msra.mxu0 %v3012_v36 }
  0x9e   : > { %2930 = vmatpush3.bf16.msra.mxu1 %v3012_v36  ;;  %2904 = vmatprep.subr.bf16.mxu0 %v3013_v54 }
  0x9f   : > { %2923 = vmatprep.subr.bf16.mxu1 %v3013_v54 }
  0xa1   : > { %2905 = vmatpush3.bf16.msra.mxu0 %v3013_v54 }
  0xa2   : > { %2931 = vmatpush3.bf16.msra.mxu1 %v3013_v54  ;;  %2906 = vmatprep.subr.bf16.mxu0 %v3014_v15 }
  0xa3   : > { %2924 = vmatprep.subr.bf16.mxu1 %v3014_v15 }
  0xa5   : > { %2907 = vmatpush3.bf16.msra.mxu0 %v3014_v15 }
  0xa6   : > { %2932 = vmatpush3.bf16.msra.mxu1 %v3014_v15  ;;  %2908 = vmatprep.subr.bf16.mxu0 %v3015_v10 }
  0xa7   : > { %2925 = vmatprep.subr.bf16.mxu1 %v3015_v10 }
  0xa9   : > { %2909 = vmatpush3.bf16.msra.mxu0 %v3015_v10 }
  0xaa   : > { %2933 = vmatpush3.bf16.msra.mxu1 %v3015_v10 }
  0xac   : > { %2911 = vmatmul.mubr.bf16.vlgmr.msra.gmra.mxu0 %v2540_v19 }
  0xad   : > { %2915 = vmatmul.mubr.bf16.vlgmr.msra.gmra.mxu1 %v2542_v20 }
  0xec   : > { %v2720_v21 = vpop.f32.mrf.mxu0 }
  0xed   : > { %v2744_v23 = vpop.f32.mrf.mxu1 }
  0xee   : > { %v344_v22 = vpop.f32.mrf.mxu0  ;;  %v490_v63 = vadd.f32 %v2744_v23, %v2720_v21 }
  0xef   : > { %v481_v25 = vpop.f32.mrf.mxu1 }
  0xf0   : > { %v2721_v24 = vpop.f32.mrf.mxu0  ;;  %v482_v13 = vadd.f32 %v481_v25, %v344_v22 }
  0xf1   : > { %v2745_v29 = vpop.f32.mrf.mxu1 }
  0xf2   : > { %v347_v27 = vpop.f32.mrf.mxu0  ;;  %v493_v14 = vadd.f32 %v2745_v29, %v2721_v24 }
  0xf3   : > { %v484_v31 = vpop.f32.mrf.mxu1 }
  0xf4   : > { %v2724_v28 = vpop.f32.mrf.mxu0 }
  0xf5   : > { %v2748_v34 = vpop.f32.mrf.mxu1 }
  0xf6   : > { %v360_v30 = vpop.f32.mrf.mxu0  ;;  %v506_v12 = vadd.f32 %v2748_v34, %v2724_v28 }
  0xf7   : > { %v497_v35 = vpop.f32.mrf.mxu1 }
  0xf8   : > { %v2725_v37 = vpop.f32.mrf.mxu0  ;;  %v498_v18 = vadd.f32 %v497_v35, %v360_v30 }
  0xf9   : > { %v2749_v39 = vpop.f32.mrf.mxu1 }
  0xfa   : > { %v363_v36 = vpop.f32.mrf.mxu0  ;;  %v509_v19 = vadd.f32 %v2749_v39, %v2725_v37 }
  0xfb   : > { %v500_v32 = vpop.f32.mrf.mxu1 }
  0xfc   : > { %v501_v28 = vadd.f32 %v500_v32, %v363_v36 }
 0x10c   : > { %v2768_v38 = vpop.f32.mrf.mxu0 }
 0x10d   : > { %v2792_v3 = vpop.f32.mrf.mxu1  ;;  %v807_v16 = vadd.f32 %v2768_v38, %v490_v63 }
 0x10e   : > { %v774_v40 = vpop.f32.mrf.mxu0 }
 0x10f   : > { %v953_v26 = vpop.f32.mrf.mxu1  ;;  %v986_v25 = vadd.f32 %v2792_v3, %v807_v16 }
 0x110   : > { %v2769_v62 = vpop.f32.mrf.mxu0 }
 0x111   : > { %v2793_v41 = vpop.f32.mrf.mxu1  ;;  %v808_v21 = vadd.f32 %v2769_v62, %v493_v14 }
 0x112   : > { %v777_v33 = vpop.f32.mrf.mxu0 }
 0x113   : > { %v956_v43 = vpop.f32.mrf.mxu1  ;;  %v987_v30 = vadd.f32 %v2793_v41, %v808_v21 }
 0x114   : > { %v2772_v42 = vpop.f32.mrf.mxu0 }
 0x115   : > { %v2796_v45 = vpop.f32.mrf.mxu1  ;;  %v811_v20 = vadd.f32 %v2772_v42, %v506_v12 }
 0x116   : > { %v790_v44 = vpop.f32.mrf.mxu0 }
 0x117   : > { %v969_v47 = vpop.f32.mrf.mxu1  ;;  %v809_v34 = vadd.f32 %v790_v44, %v498_v18  ;;  %v990_v29 = vadd.f32 %v2796_v45, %v811_v20 }
 0x118   : > { %v2773_v46 = vpop.f32.mrf.mxu0 }
 0x119   : > { %v2797_v49 = vpop.f32.mrf.mxu1  ;;  %v812_v22 = vadd.f32 %v2773_v46, %v509_v19  ;;  %v988_v39 = vadd.f32 %v969_v47, %v809_v34 }
 0x11a   : > { %v793_v48 = vpop.f32.mrf.mxu0 }
 0x11b   : > { %v972_v51 = vpop.f32.mrf.mxu1  ;;  %v810_v38 = vadd.f32 %v793_v48, %v501_v28  ;;  %v991_v12 = vadd.f32 %v2797_v49, %v812_v22 }
 0x11d   : > { %v989_v62 = vadd.f32 %v972_v51, %v810_v38 }
 0x12c   : > { %v2816_v50 = vpop.f32.mrf.mxu0 }
 0x12d   : > { %v2840_v53 = vpop.f32.mrf.mxu1  ;;  %v1165_v35 = vadd.f32 %v2816_v50, %v986_v25 }
 0x12e   : > { %v1132_v52 = vpop.f32.mrf.mxu0 }
 0x12f   : > { %v1430_v55 = vpop.f32.mrf.mxu1  ;;  %v1463_v44 = vadd.f32 %v2840_v53, %v1165_v35 }
 0x130   : > { %v2817_v54 = vpop.f32.mrf.mxu0 }
 0x131   : > { %v2841_v57 = vpop.f32.mrf.mxu1 }
 0x132   : > { %v1135_v56 = vpop.f32.mrf.mxu0 }
 0x133   : > { %v3556_v59 = vpop.f32.mrf.mxu1 }
 0x134   : > { %v2820_v58 = vpop.f32.mrf.mxu0  ;;  %3584 = vst [vmem:[#allocation2_spill] sm:$0xff] %v3556_v59 }
 0x135   : > { %v2844_v60 = vpop.f32.mrf.mxu1  ;;  %v1169_v42 = vadd.f32 %v2820_v58, %v990_v29 }
 0x136   : > { %v1148_v61 = vpop.f32.mrf.mxu0 }
 0x137   : > { %v1446_v0 = vpop.f32.mrf.mxu1  ;;  %v1467_v45 = vadd.f32 %v2844_v60, %v1169_v42 }
 0x138   : > { %v2821_v15 = vpop.f32.mrf.mxu0 }
 0x139   : > { %v2845_v1 = vpop.f32.mrf.mxu1  ;;  %v1170_v36 = vadd.f32 %v2821_v15, %v991_v12 }
 0x13a   : > { %v1151_v2 = vpop.f32.mrf.mxu0 }
 0x13b   : > { %v1449_v5 = vpop.f32.mrf.mxu1  ;;  %v1168_v46 = vadd.f32 %v1151_v2, %v989_v62  ;;  %v3588_v58 = vld [vmem:[#allocation2_spill] sm:$0xff] }
 0x14c   : > { %v2864_v4 = vpop.f32.mrf.mxu0 }
 0x14d   : > { %v2888_v6 = vpop.f32.mrf.mxu1  ;;  %v1642_v41 = vadd.f32 %v2864_v4, %v1463_v44 }
 0x14e   : > { %v1609_v7 = vpop.f32.mrf.mxu0 }
 0x14f   : > { %v3558_v8 = vpop.f32.mrf.mxu1 }
 0x150   : > { %3585 = vst [vmem:[#allocation3_spill] sm:$0xff] %v3558_v8  ;;  %v2865_v9 = vpop.f32.mrf.mxu0  ;;  %v485_v8 = vadd.f32 %v484_v31, %v347_v27 }
 0x151   : > { %v3560_v10 = vpop.f32.mrf.mxu1 }
 0x152   : > { %3586 = vst [vmem:[#allocation4_spill] sm:$0xff] %v3560_v10  ;;  %v1612_v11 = vpop.f32.mrf.mxu0  ;;  %v805_v10 = vadd.f32 %v774_v40, %v482_v13  ;;  %v806_v24 = vadd.f32 %v777_v33, %v485_v8  ;;  %v1166_v40 = vadd.f32 %v2817_v54, %v987_v30  ;;  %v1167_v13 = vadd.f32 %v1148_v61, %v988_v39 }
 0x153   : > { %v3562_v17 = vpop.f32.mrf.mxu1  ;;  %v1468_v8 = vadd.f32 %v2845_v1, %v1170_v36  ;;  %v1466_v61 = vadd.f32 %v1449_v5, %v1168_v46  ;;  %v2551_v5 = vld [vmem:[%s3580_s2] ss:$0 sm:$0xff] }
 0x154   : > { %3587 = vst [vmem:[#allocation5_spill] sm:$0xff] %v3562_v17  ;;  %v2868_v59 = vpop.f32.mrf.mxu0  ;;  %v984_v17 = vadd.f32 %v953_v26, %v805_v10  ;;  %v985_v27 = vadd.f32 %v956_v43, %v806_v24  ;;  %v1464_v26 = vadd.f32 %v2841_v57, %v1166_v40  ;;  %v1465_v50 = vadd.f32 %v1446_v0, %v1167_v13 }
 0x155   : > { %v2892_v23 = vpop.f32.mrf.mxu1  ;;  %v1646_v47 = vadd.f32 %v2868_v59, %v1467_v45 }
 0x156   : > { %v1625_v63 = vpop.f32.mrf.mxu0  ;;  %v1163_v31 = vadd.f32 %v1132_v52, %v984_v17  ;;  %v1164_v3 = vadd.f32 %v1135_v56, %v985_v27  ;;  %v1643_v54 = vadd.f32 %v2865_v9, %v1464_v26  ;;  %v1821_v56 = vadd.f32 %v2888_v6, %v1642_v41 }
 0x157   : > { %v1804_v37 = vpop.f32.mrf.mxu1  ;;  %v1644_v15 = vadd.f32 %v1625_v63, %v1465_v50  ;;  %v3589_v0 = vld [vmem:[#allocation3_spill] sm:$0xff] }
 0x158   : > { %v2869_v32 = vpop.f32.mrf.mxu0  ;;  %v1461_v48 = vadd.f32 %v1430_v55, %v1163_v31  ;;  %v1462_v43 = vadd.f32 %v3588_v58, %v1164_v3  ;;  %v1825_v55 = vadd.f32 %v2892_v23, %v1646_v47 }
 0x159   : > { %v2893_v33 = vpop.f32.mrf.mxu1  ;;  %v1647_v10 = vadd.f32 %v2869_v32, %v1468_v8  ;;  %v3590_v59 = vld [vmem:[#allocation4_spill] sm:$0xff] }
 0x15a   : > { %v1628_v49 = vpop.f32.mrf.mxu0  ;;  %v1640_v52 = vadd.f32 %v1609_v7, %v1461_v48  ;;  %v1641_v14 = vadd.f32 %v1612_v11, %v1462_v43  ;;  %v1822_v4 = vadd.f32 %v3590_v59, %v1643_v54  ;;  %v1823_v7 = vadd.f32 %v1804_v37, %v1644_v15 }
 0x15b   : > { %v1807_v51 = vpop.f32.mrf.mxu1  ;;  %v1645_v57 = vadd.f32 %v1628_v49, %v1466_v61  ;;  %v1826_v9 = vadd.f32 %v2893_v33, %v1647_v10  ;;  %v3591_v11 = vld [vmem:[#allocation5_spill] sm:$0xff] }
 0x15c   : > { %v1819_v1 = vadd.f32 %v3589_v0, %v1640_v52  ;;  %v1820_v19 = vadd.f32 %v3591_v11, %v1641_v14 }
 0x15d   : > { %v1824_v28 = vadd.f32 %v1807_v51, %v1645_v57 }
 0x16c   : > { %v2912_v53 = vpop.f32.mrf.mxu0 }
 0x16d   : > { %v2916_v60 = vpop.f32.mrf.mxu1  ;;  %v2119_v16 = vadd.f32 %v2912_v53, %v1821_v56 }
 0x16e   : > { %v2086_v2 = vpop.f32.mrf.mxu0  ;;  %v2123_v18 = vadd.f32 %v2916_v60, %v1825_v55 }
 0x16f   : > { %v2102_v17 = vpop.f32.mrf.mxu1  ;;  %v2117_v20 = vadd.f32 %v2086_v2, %v1819_v1  ;;  %v2134_v24 = vadd.f32 %v2551_v5, %v2119_v16 }
 0x170   : > { %v2913_v6 = vpop.f32.mrf.mxu0  ;;  %v2121_v34 = vadd.f32 %v2102_v17, %v1823_v7  ;;  %v2138_v30 = vadd.f32 %v2551_v5, %v2123_v18 }
 0x171   : > { %v2120_v21 = vadd.f32 %v2913_v6, %v1822_v4  ;;  %v2917_v23 = vpop.f32.mrf.mxu1  ;;  %v2132_v39 = vadd.f32 %v2551_v5, %v2117_v20 }
 0x172   : > { %v2124_v22 = vadd.f32 %v2917_v23, %v1826_v9  ;;  %v2089_v25 = vpop.f32.mrf.mxu0  ;;  %v2136_v27 = vadd.f32 %v2551_v5, %v2121_v34 }
 0x173   : > { %v2135_v29 = vadd.f32 %v2551_v5, %v2120_v21  ;;  %v2118_v38 = vadd.f32 %v2089_v25, %v1820_v19  ;;  %v2105_v63 = vpop.f32.mrf.mxu1 }
 0x174   : > { %v2139_v35 = vadd.f32 %v2551_v5, %v2124_v22  ;;  %v2122_v37 = vadd.f32 %v2105_v63, %v1824_v28 }
 0x175   : > { %v2579_v12 = vpack.c.bf16 %v2135_v29, %v2134_v24  ;;  %v2133_v42 = vadd.f32 %v2551_v5, %v2118_v38 }
 0x176   : > { %v2589_v31 = vpack.c.bf16 %v2139_v35, %v2138_v30  ;;  %v2137_v40 = vadd.f32 %v2551_v5, %v2122_v37 }
 0x177   : > { %2591 = vst [vmem:[%s170_s21 + $0x8] sm:$0xff] %v2579_v12   ;;  %v2574_v62 = vpack.c.bf16 %v2133_v42, %v2132_v39 }
 0x178   : > { %2593 = vst [vmem:[%s170_s21 + $0x18] sm:$0xff] %v2589_v31   ;;  %v2584_v13 = vpack.c.bf16 %v2137_v40, %v2136_v27 }
 0x179   : > { %2575 = vst [vmem:[%s170_s21] sm:$0xff] %v2574_v62  }
 0x17a   : > { %2592 = vst [vmem:[%s170_s21 + $0x10] sm:$0xff] %v2584_v13  }
 0x17b PF: > { %s13_s12 = sadd.s32 1, %s3022_s12  }
 0x17c   : > { %p10_p4 = scmp.ge.s32.totalorder %s13_s12, 4  }
 0x17e   :  { %12 = sbr.rel (!%p10_p4) target bundleno = 1 (0x1), region = 75 }

</bundles_post_ra>
